<compile_context>
chip_gen: v7x
topology: tpu7x:2x2x1
jax: 0.10.0
libtpu: 0.0.40
codegen_flags: <defaults>
</compile_context>

<pallas_src>
import functools

import jax
import jax.numpy as jnp
import numpy as np
from jax.experimental import pallas as pl
from jax.experimental.pallas import tpu as pltpu


# ------------------------------ in-kernel helpers -----------------------------

def _layernorm(h, gamma, beta, eps):
    """Matches the module's LayerNorm: unbiased std (torch.std), eps added to std."""
    d = h.shape[-1]
    mean = jnp.sum(h, axis=-1, keepdims=True) * (1.0 / d)
    c = h - mean
    var = jnp.sum(c * c, axis=-1, keepdims=True) * (1.0 / (d - 1))
    inv = pl.reciprocal(jnp.sqrt(var) + eps, approx=True)      # EUP, not a VALU divide
    return c * inv * gamma + beta


def _softmax_lastdim(s):
    s = s - jnp.max(s, axis=-1, keepdims=True)
    e = jnp.exp(s)
    return e * pl.reciprocal(jnp.sum(e, axis=-1, keepdims=True), approx=True)


# --------------------------------- kernel -------------------------------------

def fused_encoder_kernel(x_ref, mask_ref,
                         wq_ref, wk_ref, wv_ref,
                         g1_ref, be1_ref, w1_ref, b1_ref,
                         w2_ref, b2_ref, g2_ref, be2_ref,
                         out_ref, act_ref, *, n_heads, eps):
    """One grid step == one encoder layer.

    x_ref    : (B*S, D)  input activations (constant block; DMA'd once)
    mask_ref : (B*S, B*S) additive block-diagonal batch mask (0 / -1e30)
    w*_ref   : this layer's weights (layer axis squeezed by the BlockSpec)
    out_ref  : (B*S, D)  this layer's encoding slab
    act_ref  : (B*S, D)  f32 VMEM scratch carrying the activation across layers
    """
    layer = pl.program_id(0)

    @pl.when(layer == 0)
    def _():
        act_ref[...] = x_ref[...].astype(jnp.float32)

    x = act_ref[...]                               # (M, D) f32 residual copy
    xb = x.astype(jnp.bfloat16)                    # bf16 MXU operand
    D = x.shape[-1]
    dh = D // n_heads

    # QKV projections (bias=False), flattened over B*S.  The 1/sqrt(d_key)
    # attention scale is already folded into wq (one-time transform in
    # prepare_params; d_key == d_model in MultiHead).
    q = jnp.dot(xb, wq_ref[...], preferred_element_type=jnp.float32)
    k = jnp.dot(xb, wk_ref[...], preferred_element_type=jnp.float32)
    v = jnp.dot(xb, wv_ref[...], preferred_element_type=jnp.float32)

    # Multi-head attention over the flat (B*S) axis with a block-diagonal mask:
    # cross-batch scores get -1e30 -> exp underflows to exactly 0, so this is
    # numerically the per-batch softmax attention.  Per-head static loop over
    # lane slices keeps everything as 2-D MXU matmuls (no head-major relayout).
    neg = mask_ref[...]
    head_outs = []
    for h in range(n_heads):
        sl = slice(h * dh, (h + 1) * dh)
        qh, kh, vh = q[:, sl], k[:, sl], v[:, sl]
        s = jnp.dot(qh, kh.T, preferred_element_type=jnp.float32) + neg
        p = _softmax_lastdim(s)
        head_outs.append(jnp.dot(p, vh, preferred_element_type=jnp.float32))
    attn = jnp.concatenate(head_outs, axis=-1)     # (M, D) f32, lane-dim concat

    # Residual + LayerNorm (self-attention block).
    h1 = _layernorm(x + attn, g1_ref[...], be1_ref[...], eps)

    # Feed-forward: relu(h1 @ W1 + b1) @ W2 + b2, flattened over B*S.
    f = jnp.dot(h1.astype(jnp.bfloat16), w1_ref[...],
                preferred_element_type=jnp.float32) + b1_ref[...]
    f = jnp.maximum(f, 0.0)
    f = jnp.dot(f.astype(jnp.bfloat16), w2_ref[...],
                preferred_element_type=jnp.float32) + b2_ref[...]

    # Residual + LayerNorm (feed-forward block).
    h2 = _layernorm(h1 + f, g2_ref[...], be2_ref[...], eps)

    act_ref[...] = h2                              # carry to next layer
    out_ref[...] = h2.astype(out_ref.dtype)        # this layer's encoding


# --------------------------------- wrapper ------------------------------------

def transformer_encoder(x, stacked, *, n_heads, eps=1e-6):
    """forward: x = dropout(x) [identity in eval]; encoding = [x] + per-layer outs."""
    B, S, D = x.shape
    L = stacked["wq"].shape[0]
    H = stacked["w1"].shape[-1]
    M = B * S

    # Wrapper-side layout plumbing: flatten batch*seq before the kernel,
    # un-flatten the per-layer slabs after it.
    x_flat = x.reshape(M, D)

    # Precomputed additive block-diagonal mask (0 inside a batch, -1e30 across).
    ids = np.repeat(np.arange(B), S)
    mask = jnp.asarray(
        np.where(ids[:, None] == ids[None, :], 0.0, -1e30).astype(np.float32))

    kernel = functools.partial(fused_encoder_kernel, n_heads=n_heads, eps=eps)

    def const_spec(shape):        # whole-array block, resident across the layer grid
        return pl.BlockSpec(shape, lambda l: (0,) * len(shape))

    def layer_spec(shape):        # leading layer axis selected (and squeezed) per step
        return pl.BlockSpec((None,) + shape, lambda l: (l,) + (0,) * len(shape))

    out = pl.pallas_call(
        kernel,
        grid=(L,),
        out_shape=jax.ShapeDtypeStruct((L, M, D), x.dtype),
        in_specs=[
            const_spec((M, D)),            # x
            const_spec((M, M)),            # block-diagonal batch mask
            layer_spec((D, D)),            # wq (scale folded, bf16)
            layer_spec((D, D)),            # wk
            layer_spec((D, D)),            # wv
            layer_spec((1, D)),            # g1
            layer_spec((1, D)),            # be1
            layer_spec((D, H)),            # w1
            layer_spec((1, H)),            # b1
            layer_spec((H, D)),            # w2
            layer_spec((1, D)),            # b2
            layer_spec((1, D)),            # g2
            layer_spec((1, D)),            # be2
        ],
        out_specs=layer_spec((M, D)),
        scratch_shapes=[pltpu.VMEM((M, D), jnp.float32)],   # carried activation
        compiler_params=pltpu.CompilerParams(
            dimension_semantics=("arbitrary",),              # layers are sequential
            vmem_limit_bytes=32 * 1024 * 1024),
    )(x_flat, mask,
      stacked["wq"], stacked["wk"], stacked["wv"],
      stacked["g1"], stacked["be1"], stacked["w1"], stacked["b1"],
      stacked["w2"], stacked["b2"], stacked["g2"], stacked["be2"])

    return [x] + [out[l].reshape(B, S, D) for l in range(L)]


# ------------------------------ parameters ------------------------------------

def init_layer_params(key, D, H):
    """Master (f32) parameters; weights stored as (in, out) == torch W^T."""
    ks = jax.random.split(key, 6)
    sd, sh = 1.0 / np.sqrt(D), 1.0 / np.sqrt(H)
    f32 = jnp.float32
    return {
        "wq": jax.random.uniform(ks[0], (D, D), f32, -sd, sd),
        "wk": jax.random.uniform(ks[1], (D, D), f32, -sd, sd),
        "wv": jax.random.uniform(ks[2], (D, D), f32, -sd, sd),
        "g1": jnp.ones((1, D), f32), "be1": jnp.zeros((1, D), f32),
        "w1": jax.random.uniform(ks[3], (D, H), f32, -sd, sd),
        "b1": jax.random.uniform(ks[4], (1, H), f32, -sd, sd),
        "w2": jax.random.uniform(ks[5], (H, D), f32, -sh, sh),
        "b2": jnp.zeros((1, D), f32),
        "g2": jnp.ones((1, D), f32), "be2": jnp.zeros((1, D), f32),
    }


def prepare_params(m, D):
    """One-time kernel-side weight transform: fold the 1/sqrt(d_key) attention
    scale into wq (d_key == d_model in MultiHead) and store matmul weights in
    bf16 (MXU operands).  LayerNorm / bias parameters stay f32.
    TODO(synk): an fp8 weight variant of this transform is a v7x-only lever."""
    p = dict(m)
    p["wq"] = (m["wq"] * (1.0 / np.sqrt(D))).astype(jnp.bfloat16)
    for name in ("wk", "wv", "w1", "w2"):
        p[name] = m[name].astype(jnp.bfloat16)
    return p


def stack_params(layer_params):
    """Stack per-layer params along a leading layer axis for the fused kernel."""
    return {k: jnp.stack([p[k] for p in layer_params], axis=0)
            for k in layer_params[0]}


# ---------------------------- pure-JAX references ------------------------------

def ref_layer_mirror(x, p, n_heads, eps=1e-6):
    """Mirrors the kernel's mixed-precision policy (bf16 MXU operands, f32
    accumulation, f32 elementwise, exact reciprocals)."""
    B, S, D = x.shape
    dh = D // n_heads
    x2 = x.reshape(B * S, D).astype(jnp.float32)
    xb = x2.astype(jnp.bfloat16)
    q = jnp.dot(xb, p["wq"], preferred_element_type=jnp.float32).reshape(B, S, D)
    k = jnp.dot(xb, p["wk"], preferred_element_type=jnp.float32).reshape(B, S, D)
    v = jnp.dot(xb, p["wv"], preferred_element_type=jnp.float32).reshape(B, S, D)
    outs = []
    for h in range(n_heads):
        sl = slice(h * dh, (h + 1) * dh)
        s = jnp.einsum("bqd,bkd->bqk", q[..., sl], k[..., sl])
        pr = jax.nn.softmax(s, axis=-1)
        outs.append(jnp.einsum("bqk,bkd->bqd", pr, v[..., sl]))
    attn = jnp.concatenate(outs, axis=-1).reshape(B * S, D)

    def ln(h_, g, b):
        mu = h_.mean(-1, keepdims=True)
        c = h_ - mu
        std = jnp.sqrt(jnp.sum(c * c, -1, keepdims=True) / (D - 1))
        return c / (std + eps) * g + b

    h1 = ln(x2 + attn, p["g1"], p["be1"])
    f = jnp.dot(h1.astype(jnp.bfloat16), p["w1"],
                preferred_element_type=jnp.float32) + p["b1"]
    f = jnp.maximum(f, 0.0)
    f = jnp.dot(f.astype(jnp.bfloat16), p["w2"],
                preferred_element_type=jnp.float32) + p["b2"]
    return ln(h1 + f, p["g2"], p["be2"]).reshape(B, S, D)


def ref_layer_f32(x, m, n_heads, eps=1e-6):
    """PyTorch-module semantics in pure f32: scores / sqrt(d_model), per-head
    softmax attention, torch.std-based LayerNorm with eps added to std."""
    B, S, D = x.shape
    dh = D // n_heads
    scale = np.sqrt(D)
    q, k, v = x @ m["wq"], x @ m["wk"], x @ m["wv"]
    outs = []
    for h in range(n_heads):
        sl = slice(h * dh, (h + 1) * dh)
        s = jnp.einsum("bqd,bkd->bqk", q[..., sl], k[..., sl]) / scale
        pr = jax.nn.softmax(s, axis=-1)
        outs.append(jnp.einsum("bqk,bkd->bqd", pr, v[..., sl]))
    attn = jnp.concatenate(outs, axis=-1)

    def ln(h_, g, b):
        mu = h_.mean(-1, keepdims=True)
        std = jnp.sqrt(jnp.sum((h_ - mu) ** 2, -1, keepdims=True) / (D - 1))
        return g * (h_ - mu) / (std + eps) + b

    h1 = ln(x + attn, m["g1"], m["be1"])
    f = jnp.maximum(h1 @ m["w1"] + m["b1"], 0.0) @ m["w2"] + m["b2"]
    return ln(h1 + f, m["g2"], m["be2"])


# ----------------------------------- main ---------------------------------------

if __name__ == "__main__":
    B, S, D = 2, 8, 32
    n_heads, hidden, num_layers = 4, 64, 2

    key = jax.random.PRNGKey(0)
    kx, *kls = jax.random.split(key, 1 + num_layers)
    x = jax.random.normal(kx, (B, S, D), jnp.float32)
    master = [init_layer_params(k, D, hidden) for k in kls]
    prepared = [prepare_params(m, D) for m in master]
    stacked = stack_params(prepared)

    encoding = transformer_encoder(x, stacked, n_heads=n_heads)
    encoding = [jax.block_until_ready(e) for e in encoding]
    assert len(encoding) == num_layers + 1
    assert all(e.shape == (B, S, D) for e in encoding)

    # Check 1: reference mirroring the kernel's mixed-precision policy
    # (remaining deltas: approximate EUP reciprocal + reduction order).
    xr = x
    for got, p in zip(encoding[1:], prepared):
        xr = ref_layer_mirror(xr, p, n_heads)
        np.testing.assert_allclose(np.asarray(got), np.asarray(xr),
                                   rtol=2e-2, atol=2e-2)

    # Check 2: PyTorch-module semantics in pure f32 (guards the wq scale folding,
    # the block-diagonal batch masking, and the torch.std-style LayerNorm);
    # slack covers the bf16 MXU operands.
    xf = x
    for got, m in zip(encoding[1:], master):
        xf = ref_layer_f32(xf, m, n_heads)
        np.testing.assert_allclose(np.asarray(got), np.asarray(xf),
                                   rtol=5e-2, atol=5e-2)

    print("KERNEL_OK")
</pallas_src>

<mosaic_0001>
module attributes {stable_mosaic.version = 11 : i64} {
  func.func @fused_encoder_kernel(%arg0: i32, %arg1: memref<16x32xf32, #tpu.memory_space<vmem>>, %arg2: memref<16x16xf32, #tpu.memory_space<vmem>>, %arg3: memref<1x32x32xbf16, #tpu.memory_space<vmem>>, %arg4: memref<1x32x32xbf16, #tpu.memory_space<vmem>>, %arg5: memref<1x32x32xbf16, #tpu.memory_space<vmem>>, %arg6: memref<1x1x32xf32, #tpu.memory_space<vmem>>, %arg7: memref<1x1x32xf32, #tpu.memory_space<vmem>>, %arg8: memref<1x32x64xbf16, #tpu.memory_space<vmem>>, %arg9: memref<1x1x64xf32, #tpu.memory_space<vmem>>, %arg10: memref<1x64x32xbf16, #tpu.memory_space<vmem>>, %arg11: memref<1x1x32xf32, #tpu.memory_space<vmem>>, %arg12: memref<1x1x32xf32, #tpu.memory_space<vmem>>, %arg13: memref<1x1x32xf32, #tpu.memory_space<vmem>>, %arg14: memref<1x16x32xf32, #tpu.memory_space<vmem>>, %arg15: memref<16x32xf32, #tpu.memory_space<vmem>>) attributes {dimension_semantics = [#tpu.dimension_semantics<arbitrary>], iteration_bounds = array<i64: 2>, scalar_prefetch = 0 : i64, scratch_operands = 1 : i64, tpu.core_type = #tpu.core_type<tc>, window_params = [{pipeline_mode = #tpu.pipeline_mode<synchronous>, transform_indices = @transform_0, window_bounds = array<i64: 16, 32>}, {pipeline_mode = #tpu.pipeline_mode<synchronous>, transform_indices = @transform_1, window_bounds = array<i64: 16, 16>}, {transform_indices = @transform_2, window_bounds = array<i64: 1, 32, 32>}, {transform_indices = @transform_3, window_bounds = array<i64: 1, 32, 32>}, {transform_indices = @transform_4, window_bounds = array<i64: 1, 32, 32>}, {transform_indices = @transform_5, window_bounds = array<i64: 1, 1, 32>}, {transform_indices = @transform_6, window_bounds = array<i64: 1, 1, 32>}, {transform_indices = @transform_7, window_bounds = array<i64: 1, 32, 64>}, {transform_indices = @transform_8, window_bounds = array<i64: 1, 1, 64>}, {transform_indices = @transform_9, window_bounds = array<i64: 1, 64, 32>}, {transform_indices = @transform_10, window_bounds = array<i64: 1, 1, 32>}, {transform_indices = @transform_11, window_bounds = array<i64: 1, 1, 32>}, {transform_indices = @transform_12, window_bounds = array<i64: 1, 1, 32>}, {transform_indices = @transform_13, window_bounds = array<i64: 1, 16, 32>}]} {
    %c0_i32 = arith.constant 0 : i32
    %0 = arith.cmpi eq, %arg0, %c0_i32 : i32
    %1 = arith.extui %0 : i1 to i32
    %c0_i32_0 = arith.constant 0 : i32
    %2 = arith.cmpi ne, %1, %c0_i32_0 : i32
    scf.if %2 {
      %c0_73 = arith.constant 0 : index
      %c0_74 = arith.constant 0 : index
      %158 = vector.load %arg1[%c0_73, %c0_74] : memref<16x32xf32, #tpu.memory_space<vmem>>, vector<16x32xf32>
      %c0_75 = arith.constant 0 : index
      %c0_76 = arith.constant 0 : index
      %159 = vector.load %arg15[%c0_75, %c0_76] : memref<16x32xf32, #tpu.memory_space<vmem>>, vector<16x32xf32>
      tpu.vector_store %arg15[%c0_75, %c0_76], %158 {strides = array<i32>} : memref<16x32xf32, #tpu.memory_space<vmem>>, vector<16x32xf32>,
    } else {
    }
    %c0 = arith.constant 0 : index
    %c0_1 = arith.constant 0 : index
    %3 = vector.load %arg15[%c0, %c0_1] : memref<16x32xf32, #tpu.memory_space<vmem>>, vector<16x32xf32>
    %4 = arith.truncf %3 : vector<16x32xf32> to vector<16x32xbf16>
    %c0_2 = arith.constant 0 : index
    %c0_3 = arith.constant 0 : index
    %c0_4 = arith.constant 0 : index
    %5 = vector.load %arg3[%c0_2, %c0_3, %c0_4] : memref<1x32x32xbf16, #tpu.memory_space<vmem>>, vector<1x32x32xbf16>
    %6 = vector.shape_cast %5 : vector<1x32x32xbf16> to vector<32x32xbf16>
    %cst = arith.constant dense<0.000000e+00> : vector<16x32xf32>
    %7 = tpu.matmul %4, %6, %cst {dimension_numbers = #tpu.dot_dimension_numbers<[1], [0], [0], [1], [0, 0, 1, 1], [], []>} : vector<16x32xbf16>, vector<32x32xbf16>, vector<16x32xf32> -> vector<16x32xf32>
    %c0_5 = arith.constant 0 : index
    %c0_6 = arith.constant 0 : index
    %c0_7 = arith.constant 0 : index
    %8 = vector.load %arg4[%c0_5, %c0_6, %c0_7] : memref<1x32x32xbf16, #tpu.memory_space<vmem>>, vector<1x32x32xbf16>
    %9 = vector.shape_cast %8 : vector<1x32x32xbf16> to vector<32x32xbf16>
    %cst_8 = arith.constant dense<0.000000e+00> : vector<16x32xf32>
    %10 = tpu.matmul %4, %9, %cst_8 {dimension_numbers = #tpu.dot_dimension_numbers<[1], [0], [0], [1], [0, 0, 1, 1], [], []>} : vector<16x32xbf16>, vector<32x32xbf16>, vector<16x32xf32> -> vector<16x32xf32>
    %c0_9 = arith.constant 0 : index
    %c0_10 = arith.constant 0 : index
    %c0_11 = arith.constant 0 : index
    %11 = vector.load %arg5[%c0_9, %c0_10, %c0_11] : memref<1x32x32xbf16, #tpu.memory_space<vmem>>, vector<1x32x32xbf16>
    %12 = vector.shape_cast %11 : vector<1x32x32xbf16> to vector<32x32xbf16>
    %cst_12 = arith.constant dense<0.000000e+00> : vector<16x32xf32>
    %13 = tpu.matmul %4, %12, %cst_12 {dimension_numbers = #tpu.dot_dimension_numbers<[1], [0], [0], [1], [0, 0, 1, 1], [], []>} : vector<16x32xbf16>, vector<32x32xbf16>, vector<16x32xf32> -> vector<16x32xf32>
    %c0_13 = arith.constant 0 : index
    %c0_14 = arith.constant 0 : index
    %14 = vector.load %arg2[%c0_13, %c0_14] : memref<16x16xf32, #tpu.memory_space<vmem>>, vector<16x16xf32>
    %15 = vector.extract_strided_slice %7 {offsets = [0, 0], sizes = [16, 8], strides = [1, 1]} : vector<16x32xf32> to vector<16x8xf32>
    %16 = vector.extract_strided_slice %10 {offsets = [0, 0], sizes = [16, 8], strides = [1, 1]} : vector<16x32xf32> to vector<16x8xf32>
    %17 = vector.extract_strided_slice %13 {offsets = [0, 0], sizes = [16, 8], strides = [1, 1]} : vector<16x32xf32> to vector<16x8xf32>
    %18 = tpu.transpose %16, [1, 0] : vector<16x8xf32> -> vector<8x16xf32>
    %cst_15 = arith.constant dense<0.000000e+00> : vector<16x16xf32>
    %19 = tpu.matmul %15, %18, %cst_15 {dimension_numbers = #tpu.dot_dimension_numbers<[1], [0], [0], [1], [0, 0, 1, 1], [], []>} : vector<16x8xf32>, vector<8x16xf32>, vector<16x16xf32> -> vector<16x16xf32>
    %20 = arith.addf %19, %14 : vector<16x16xf32>
    %cst_16 = arith.constant dense<0xFF800000> : vector<16xf32>
    %21 = vector.multi_reduction <maximumf>, %20, %cst_16 [1] : vector<16x16xf32> to vector<16xf32>
    %22 = vector.shape_cast %21 : vector<16xf32> to vector<16x1xf32>
    %23 = vector.broadcast %22 : vector<16x1xf32> to vector<16x16xf32>
    %24 = arith.subf %20, %23 : vector<16x16xf32>
    %25 = math.exp %24 : vector<16x16xf32>
    %cst_17 = arith.constant dense<0.000000e+00> : vector<16xf32>
    %26 = vector.multi_reduction <add>, %25, %cst_17 [1] : vector<16x16xf32> to vector<16xf32>
    %27 = vector.shape_cast %26 : vector<16xf32> to vector<16x1xf32>
    %28 = tpu.reciprocal %27 {approx = true} : vector<16x1xf32> -> vector<16x1xf32>
    %29 = vector.broadcast %28 : vector<16x1xf32> to vector<16x16xf32>
    %30 = arith.mulf %25, %29 : vector<16x16xf32>
    %cst_18 = arith.constant dense<0.000000e+00> : vector<16x8xf32>
    %31 = tpu.matmul %30, %17, %cst_18 {dimension_numbers = #tpu.dot_dimension_numbers<[1], [0], [0], [1], [0, 0, 1, 1], [], []>} : vector<16x16xf32>, vector<16x8xf32>, vector<16x8xf32> -> vector<16x8xf32>
    %32 = vector.extract_strided_slice %7 {offsets = [0, 8], sizes = [16, 8], strides = [1, 1]} : vector<16x32xf32> to vector<16x8xf32>
    %33 = vector.extract_strided_slice %10 {offsets = [0, 8], sizes = [16, 8], strides = [1, 1]} : vector<16x32xf32> to vector<16x8xf32>
    %34 = vector.extract_strided_slice %13 {offsets = [0, 8], sizes = [16, 8], strides = [1, 1]} : vector<16x32xf32> to vector<16x8xf32>
    %35 = tpu.transpose %33, [1, 0] : vector<16x8xf32> -> vector<8x16xf32>
    %cst_19 = arith.constant dense<0.000000e+00> : vector<16x16xf32>
    %36 = tpu.matmul %32, %35, %cst_19 {dimension_numbers = #tpu.dot_dimension_numbers<[1], [0], [0], [1], [0, 0, 1, 1], [], []>} : vector<16x8xf32>, vector<8x16xf32>, vector<16x16xf32> -> vector<16x16xf32>
    %37 = arith.addf %36, %14 : vector<16x16xf32>
    %cst_20 = arith.constant dense<0xFF800000> : vector<16xf32>
    %38 = vector.multi_reduction <maximumf>, %37, %cst_20 [1] : vector<16x16xf32> to vector<16xf32>
    %39 = vector.shape_cast %38 : vector<16xf32> to vector<16x1xf32>
    %40 = vector.broadcast %39 : vector<16x1xf32> to vector<16x16xf32>
    %41 = arith.subf %37, %40 : vector<16x16xf32>
    %42 = math.exp %41 : vector<16x16xf32>
    %cst_21 = arith.constant dense<0.000000e+00> : vector<16xf32>
    %43 = vector.multi_reduction <add>, %42, %cst_21 [1] : vector<16x16xf32> to vector<16xf32>
    %44 = vector.shape_cast %43 : vector<16xf32> to vector<16x1xf32>
    %45 = tpu.reciprocal %44 {approx = true} : vector<16x1xf32> -> vector<16x1xf32>
    %46 = vector.broadcast %45 : vector<16x1xf32> to vector<16x16xf32>
    %47 = arith.mulf %42, %46 : vector<16x16xf32>
    %cst_22 = arith.constant dense<0.000000e+00> : vector<16x8xf32>
    %48 = tpu.matmul %47, %34, %cst_22 {dimension_numbers = #tpu.dot_dimension_numbers<[1], [0], [0], [1], [0, 0, 1, 1], [], []>} : vector<16x16xf32>, vector<16x8xf32>, vector<16x8xf32> -> vector<16x8xf32>
    %49 = vector.extract_strided_slice %7 {offsets = [0, 16], sizes = [16, 8], strides = [1, 1]} : vector<16x32xf32> to vector<16x8xf32>
    %50 = vector.extract_strided_slice %10 {offsets = [0, 16], sizes = [16, 8], strides = [1, 1]} : vector<16x32xf32> to vector<16x8xf32>
    %51 = vector.extract_strided_slice %13 {offsets = [0, 16], sizes = [16, 8], strides = [1, 1]} : vector<16x32xf32> to vector<16x8xf32>
    %52 = tpu.transpose %50, [1, 0] : vector<16x8xf32> -> vector<8x16xf32>
    %cst_23 = arith.constant dense<0.000000e+00> : vector<16x16xf32>
    %53 = tpu.matmul %49, %52, %cst_23 {dimension_numbers = #tpu.dot_dimension_numbers<[1], [0], [0], [1], [0, 0, 1, 1], [], []>} : vector<16x8xf32>, vector<8x16xf32>, vector<16x16xf32> -> vector<16x16xf32>
    %54 = arith.addf %53, %14 : vector<16x16xf32>
    %cst_24 = arith.constant dense<0xFF800000> : vector<16xf32>
    %55 = vector.multi_reduction <maximumf>, %54, %cst_24 [1] : vector<16x16xf32> to vector<16xf32>
    %56 = vector.shape_cast %55 : vector<16xf32> to vector<16x1xf32>
    %57 = vector.broadcast %56 : vector<16x1xf32> to vector<16x16xf32>
    %58 = arith.subf %54, %57 : vector<16x16xf32>
    %59 = math.exp %58 : vector<16x16xf32>
    %cst_25 = arith.constant dense<0.000000e+00> : vector<16xf32>
    %60 = vector.multi_reduction <add>, %59, %cst_25 [1] : vector<16x16xf32> to vector<16xf32>
    %61 = vector.shape_cast %60 : vector<16xf32> to vector<16x1xf32>
    %62 = tpu.reciprocal %61 {approx = true} : vector<16x1xf32> -> vector<16x1xf32>
    %63 = vector.broadcast %62 : vector<16x1xf32> to vector<16x16xf32>
    %64 = arith.mulf %59, %63 : vector<16x16xf32>
    %cst_26 = arith.constant dense<0.000000e+00> : vector<16x8xf32>
    %65 = tpu.matmul %64, %51, %cst_26 {dimension_numbers = #tpu.dot_dimension_numbers<[1], [0], [0], [1], [0, 0, 1, 1], [], []>} : vector<16x16xf32>, vector<16x8xf32>, vector<16x8xf32> -> vector<16x8xf32>
    %66 = vector.extract_strided_slice %7 {offsets = [0, 24], sizes = [16, 8], strides = [1, 1]} : vector<16x32xf32> to vector<16x8xf32>
    %67 = vector.extract_strided_slice %10 {offsets = [0, 24], sizes = [16, 8], strides = [1, 1]} : vector<16x32xf32> to vector<16x8xf32>
    %68 = vector.extract_strided_slice %13 {offsets = [0, 24], sizes = [16, 8], strides = [1, 1]} : vector<16x32xf32> to vector<16x8xf32>
    %69 = tpu.transpose %67, [1, 0] : vector<16x8xf32> -> vector<8x16xf32>
    %cst_27 = arith.constant dense<0.000000e+00> : vector<16x16xf32>
    %70 = tpu.matmul %66, %69, %cst_27 {dimension_numbers = #tpu.dot_dimension_numbers<[1], [0], [0], [1], [0, 0, 1, 1], [], []>} : vector<16x8xf32>, vector<8x16xf32>, vector<16x16xf32> -> vector<16x16xf32>
    %71 = arith.addf %70, %14 : vector<16x16xf32>
    %cst_28 = arith.constant dense<0xFF800000> : vector<16xf32>
    %72 = vector.multi_reduction <maximumf>, %71, %cst_28 [1] : vector<16x16xf32> to vector<16xf32>
    %73 = vector.shape_cast %72 : vector<16xf32> to vector<16x1xf32>
    %74 = vector.broadcast %73 : vector<16x1xf32> to vector<16x16xf32>
    %75 = arith.subf %71, %74 : vector<16x16xf32>
    %76 = math.exp %75 : vector<16x16xf32>
    %cst_29 = arith.constant dense<0.000000e+00> : vector<16xf32>
    %77 = vector.multi_reduction <add>, %76, %cst_29 [1] : vector<16x16xf32> to vector<16xf32>
    %78 = vector.shape_cast %77 : vector<16xf32> to vector<16x1xf32>
    %79 = tpu.reciprocal %78 {approx = true} : vector<16x1xf32> -> vector<16x1xf32>
    %80 = vector.broadcast %79 : vector<16x1xf32> to vector<16x16xf32>
    %81 = arith.mulf %76, %80 : vector<16x16xf32>
    %cst_30 = arith.constant dense<0.000000e+00> : vector<16x8xf32>
    %82 = tpu.matmul %81, %68, %cst_30 {dimension_numbers = #tpu.dot_dimension_numbers<[1], [0], [0], [1], [0, 0, 1, 1], [], []>} : vector<16x16xf32>, vector<16x8xf32>, vector<16x8xf32> -> vector<16x8xf32>
    %83 = tpu.concatenate %31, %48, %65, %82 in 1 : vector<16x8xf32>, vector<16x8xf32>, vector<16x8xf32>, vector<16x8xf32> -> vector<16x32xf32>
    %84 = arith.addf %3, %83 : vector<16x32xf32>
    %c0_31 = arith.constant 0 : index
    %c0_32 = arith.constant 0 : index
    %c0_33 = arith.constant 0 : index
    %85 = vector.load %arg6[%c0_31, %c0_32, %c0_33] : memref<1x1x32xf32, #tpu.memory_space<vmem>>, vector<1x1x32xf32>
    %86 = vector.shape_cast %85 : vector<1x1x32xf32> to vector<1x32xf32>
    %c0_34 = arith.constant 0 : index
    %c0_35 = arith.constant 0 : index
    %c0_36 = arith.constant 0 : index
    %87 = vector.load %arg7[%c0_34, %c0_35, %c0_36] : memref<1x1x32xf32, #tpu.memory_space<vmem>>, vector<1x1x32xf32>
    %88 = vector.shape_cast %87 : vector<1x1x32xf32> to vector<1x32xf32>
    %cst_37 = arith.constant dense<0.000000e+00> : vector<16xf32>
    %89 = vector.multi_reduction <add>, %84, %cst_37 [1] : vector<16x32xf32> to vector<16xf32>
    %90 = vector.shape_cast %89 : vector<16xf32> to vector<16x1xf32>
    %cst_38 = arith.constant 3.125000e-02 : f32
    %91 = vector.broadcast %cst_38 : f32 to vector<16x1xf32>
    %92 = arith.mulf %90, %91 : vector<16x1xf32>
    %93 = vector.broadcast %92 : vector<16x1xf32> to vector<16x32xf32>
    %94 = arith.subf %84, %93 : vector<16x32xf32>
    %95 = arith.mulf %94, %94 : vector<16x32xf32>
    %cst_39 = arith.constant dense<0.000000e+00> : vector<16xf32>
    %96 = vector.multi_reduction <add>, %95, %cst_39 [1] : vector<16x32xf32> to vector<16xf32>
    %97 = vector.shape_cast %96 : vector<16xf32> to vector<16x1xf32>
    %cst_40 = arith.constant 0.0322580636 : f32
    %98 = vector.broadcast %cst_40 : f32 to vector<16x1xf32>
    %99 = arith.mulf %97, %98 : vector<16x1xf32>
    %100 = math.sqrt %99 : vector<16x1xf32>
    %cst_41 = arith.constant 9.99999997E-7 : f32
    %101 = vector.broadcast %cst_41 : f32 to vector<16x1xf32>
    %102 = arith.addf %100, %101 : vector<16x1xf32>
    %103 = tpu.reciprocal %102 {approx = true} : vector<16x1xf32> -> vector<16x1xf32>
    %104 = vector.broadcast %103 : vector<16x1xf32> to vector<16x32xf32>
    %105 = arith.mulf %94, %104 : vector<16x32xf32>
    %106 = vector.broadcast %86 : vector<1x32xf32> to vector<16x32xf32>
    %107 = arith.mulf %105, %106 : vector<16x32xf32>
    %108 = vector.broadcast %88 : vector<1x32xf32> to vector<16x32xf32>
    %109 = arith.addf %107, %108 : vector<16x32xf32>
    %110 = arith.truncf %109 : vector<16x32xf32> to vector<16x32xbf16>
    %c0_42 = arith.constant 0 : index
    %c0_43 = arith.constant 0 : index
    %c0_44 = arith.constant 0 : index
    %111 = vector.load %arg8[%c0_42, %c0_43, %c0_44] : memref<1x32x64xbf16, #tpu.memory_space<vmem>>, vector<1x32x64xbf16>
    %112 = vector.shape_cast %111 : vector<1x32x64xbf16> to vector<32x64xbf16>
    %cst_45 = arith.constant dense<0.000000e+00> : vector<16x64xf32>
    %113 = tpu.matmul %110, %112, %cst_45 {dimension_numbers = #tpu.dot_dimension_numbers<[1], [0], [0], [1], [0, 0, 1, 1], [], []>} : vector<16x32xbf16>, vector<32x64xbf16>, vector<16x64xf32> -> vector<16x64xf32>
    %c0_46 = arith.constant 0 : index
    %c0_47 = arith.constant 0 : index
    %c0_48 = arith.constant 0 : index
    %114 = vector.load %arg9[%c0_46, %c0_47, %c0_48] : memref<1x1x64xf32, #tpu.memory_space<vmem>>, vector<1x1x64xf32>
    %115 = vector.shape_cast %114 : vector<1x1x64xf32> to vector<1x64xf32>
    %116 = vector.broadcast %115 : vector<1x64xf32> to vector<16x64xf32>
    %117 = arith.addf %113, %116 : vector<16x64xf32>
    %cst_49 = arith.constant 0.000000e+00 : f32
    %118 = vector.broadcast %cst_49 : f32 to vector<16x64xf32>
    %119 = arith.maximumf %117, %118 : vector<16x64xf32>
    %120 = arith.truncf %119 : vector<16x64xf32> to vector<16x64xbf16>
    %c0_50 = arith.constant 0 : index
    %c0_51 = arith.constant 0 : index
    %c0_52 = arith.constant 0 : index
    %121 = vector.load %arg10[%c0_50, %c0_51, %c0_52] : memref<1x64x32xbf16, #tpu.memory_space<vmem>>, vector<1x64x32xbf16>
    %122 = vector.shape_cast %121 : vector<1x64x32xbf16> to vector<64x32xbf16>
    %cst_53 = arith.constant dense<0.000000e+00> : vector<16x32xf32>
    %123 = tpu.matmul %120, %122, %cst_53 {dimension_numbers = #tpu.dot_dimension_numbers<[1], [0], [0], [1], [0, 0, 1, 1], [], []>} : vector<16x64xbf16>, vector<64x32xbf16>, vector<16x32xf32> -> vector<16x32xf32>
    %c0_54 = arith.constant 0 : index
    %c0_55 = arith.constant 0 : index
    %c0_56 = arith.constant 0 : index
    %124 = vector.load %arg11[%c0_54, %c0_55, %c0_56] : memref<1x1x32xf32, #tpu.memory_space<vmem>>, vector<1x1x32xf32>
    %125 = vector.shape_cast %124 : vector<1x1x32xf32> to vector<1x32xf32>
    %126 = vector.broadcast %125 : vector<1x32xf32> to vector<16x32xf32>
    %127 = arith.addf %123, %126 : vector<16x32xf32>
    %128 = arith.addf %109, %127 : vector<16x32xf32>
    %c0_57 = arith.constant 0 : index
    %c0_58 = arith.constant 0 : index
    %c0_59 = arith.constant 0 : index
    %129 = vector.load %arg12[%c0_57, %c0_58, %c0_59] : memref<1x1x32xf32, #tpu.memory_space<vmem>>, vector<1x1x32xf32>
    %130 = vector.shape_cast %129 : vector<1x1x32xf32> to vector<1x32xf32>
    %c0_60 = arith.constant 0 : index
    %c0_61 = arith.constant 0 : index
    %c0_62 = arith.constant 0 : index
    %131 = vector.load %arg13[%c0_60, %c0_61, %c0_62] : memref<1x1x32xf32, #tpu.memory_space<vmem>>, vector<1x1x32xf32>
    %132 = vector.shape_cast %131 : vector<1x1x32xf32> to vector<1x32xf32>
    %cst_63 = arith.constant dense<0.000000e+00> : vector<16xf32>
    %133 = vector.multi_reduction <add>, %128, %cst_63 [1] : vector<16x32xf32> to vector<16xf32>
    %134 = vector.shape_cast %133 : vector<16xf32> to vector<16x1xf32>
    %cst_64 = arith.constant 3.125000e-02 : f32
    %135 = vector.broadcast %cst_64 : f32 to vector<16x1xf32>
    %136 = arith.mulf %134, %135 : vector<16x1xf32>
    %137 = vector.broadcast %136 : vector<16x1xf32> to vector<16x32xf32>
    %138 = arith.subf %128, %137 : vector<16x32xf32>
    %139 = arith.mulf %138, %138 : vector<16x32xf32>
    %cst_65 = arith.constant dense<0.000000e+00> : vector<16xf32>
    %140 = vector.multi_reduction <add>, %139, %cst_65 [1] : vector<16x32xf32> to vector<16xf32>
    %141 = vector.shape_cast %140 : vector<16xf32> to vector<16x1xf32>
    %cst_66 = arith.constant 0.0322580636 : f32
    %142 = vector.broadcast %cst_66 : f32 to vector<16x1xf32>
    %143 = arith.mulf %141, %142 : vector<16x1xf32>
    %144 = math.sqrt %143 : vector<16x1xf32>
    %cst_67 = arith.constant 9.99999997E-7 : f32
    %145 = vector.broadcast %cst_67 : f32 to vector<16x1xf32>
    %146 = arith.addf %144, %145 : vector<16x1xf32>
    %147 = tpu.reciprocal %146 {approx = true} : vector<16x1xf32> -> vector<16x1xf32>
    %148 = vector.broadcast %147 : vector<16x1xf32> to vector<16x32xf32>
    %149 = arith.mulf %138, %148 : vector<16x32xf32>
    %150 = vector.broadcast %130 : vector<1x32xf32> to vector<16x32xf32>
    %151 = arith.mulf %149, %150 : vector<16x32xf32>
    %152 = vector.broadcast %132 : vector<1x32xf32> to vector<16x32xf32>
    %153 = arith.addf %151, %152 : vector<16x32xf32>
    %c0_68 = arith.constant 0 : index
    %c0_69 = arith.constant 0 : index
    %154 = vector.load %arg15[%c0_68, %c0_69] : memref<16x32xf32, #tpu.memory_space<vmem>>, vector<16x32xf32>
    tpu.vector_store %arg15[%c0_68, %c0_69], %153 {strides = array<i32>} : memref<16x32xf32, #tpu.memory_space<vmem>>, vector<16x32xf32>,
    %c0_70 = arith.constant 0 : index
    %c0_71 = arith.constant 0 : index
    %c0_72 = arith.constant 0 : index
    %155 = vector.load %arg14[%c0_70, %c0_71, %c0_72] : memref<1x16x32xf32, #tpu.memory_space<vmem>>, vector<1x16x32xf32>
    %156 = vector.shape_cast %155 : vector<1x16x32xf32> to vector<16x32xf32>
    %157 = vector.shape_cast %153 : vector<16x32xf32> to vector<1x16x32xf32>
    tpu.vector_store %arg14[%c0_70, %c0_71, %c0_72], %157 {strides = array<i32>} : memref<1x16x32xf32, #tpu.memory_space<vmem>>, vector<1x16x32xf32>,
    return
  }
  func.func @transform_0(%arg0: i32) -> (i32, i32) {
    %c0_i32 = arith.constant 0 : i32
    %c0_i32_0 = arith.constant 0 : i32
    %c0_i32_1 = arith.constant 0 : i32
    return %c0_i32, %c0_i32_0 : i32, i32
  }
  func.func @transform_1(%arg0: i32) -> (i32, i32) {
    %c0_i32 = arith.constant 0 : i32
    %c0_i32_0 = arith.constant 0 : i32
    %c0_i32_1 = arith.constant 0 : i32
    return %c0_i32, %c0_i32_0 : i32, i32
  }
  func.func @transform_2(%arg0: i32) -> (i32, i32, i32) {
    %c0_i32 = arith.constant 0 : i32
    %c0_i32_0 = arith.constant 0 : i32
    %c0_i32_1 = arith.constant 0 : i32
    return %arg0, %c0_i32, %c0_i32_0 : i32, i32, i32
  }
  func.func @transform_3(%arg0: i32) -> (i32, i32, i32) {
    %c0_i32 = arith.constant 0 : i32
    %c0_i32_0 = arith.constant 0 : i32
    %c0_i32_1 = arith.constant 0 : i32
    return %arg0, %c0_i32, %c0_i32_0 : i32, i32, i32
  }
  func.func @transform_4(%arg0: i32) -> (i32, i32, i32) {
    %c0_i32 = arith.constant 0 : i32
    %c0_i32_0 = arith.constant 0 : i32
    %c0_i32_1 = arith.constant 0 : i32
    return %arg0, %c0_i32, %c0_i32_0 : i32, i32, i32
  }
  func.func @transform_5(%arg0: i32) -> (i32, i32, i32) {
    %c0_i32 = arith.constant 0 : i32
    %c0_i32_0 = arith.constant 0 : i32
    %c0_i32_1 = arith.constant 0 : i32
    return %arg0, %c0_i32, %c0_i32_0 : i32, i32, i32
  }
  func.func @transform_6(%arg0: i32) -> (i32, i32, i32) {
    %c0_i32 = arith.constant 0 : i32
    %c0_i32_0 = arith.constant 0 : i32
    %c0_i32_1 = arith.constant 0 : i32
    return %arg0, %c0_i32, %c0_i32_0 : i32, i32, i32
  }
  func.func @transform_7(%arg0: i32) -> (i32, i32, i32) {
    %c0_i32 = arith.constant 0 : i32
    %c0_i32_0 = arith.constant 0 : i32
    %c0_i32_1 = arith.constant 0 : i32
    return %arg0, %c0_i32, %c0_i32_0 : i32, i32, i32
  }
  func.func @transform_8(%arg0: i32) -> (i32, i32, i32) {
    %c0_i32 = arith.constant 0 : i32
    %c0_i32_0 = arith.constant 0 : i32
    %c0_i32_1 = arith.constant 0 : i32
    return %arg0, %c0_i32, %c0_i32_0 : i32, i32, i32
  }
  func.func @transform_9(%arg0: i32) -> (i32, i32, i32) {
    %c0_i32 = arith.constant 0 : i32
    %c0_i32_0 = arith.constant 0 : i32
    %c0_i32_1 = arith.constant 0 : i32
    return %arg0, %c0_i32, %c0_i32_0 : i32, i32, i32
  }
  func.func @transform_10(%arg0: i32) -> (i32, i32, i32) {
    %c0_i32 = arith.constant 0 : i32
    %c0_i32_0 = arith.constant 0 : i32
    %c0_i32_1 = arith.constant 0 : i32
    return %arg0, %c0_i32, %c0_i32_0 : i32, i32, i32
  }
  func.func @transform_11(%arg0: i32) -> (i32, i32, i32) {
    %c0_i32 = arith.constant 0 : i32
    %c0_i32_0 = arith.constant 0 : i32
    %c0_i32_1 = arith.constant 0 : i32
    return %arg0, %c0_i32, %c0_i32_0 : i32, i32, i32
  }
  func.func @transform_12(%arg0: i32) -> (i32, i32, i32) {
    %c0_i32 = arith.constant 0 : i32
    %c0_i32_0 = arith.constant 0 : i32
    %c0_i32_1 = arith.constant 0 : i32
    return %arg0, %c0_i32, %c0_i32_0 : i32, i32, i32
  }
  func.func @transform_13(%arg0: i32) -> (i32, i32, i32) {
    %c0_i32 = arith.constant 0 : i32
    %c0_i32_0 = arith.constant 0 : i32
    %c0_i32_1 = arith.constant 0 : i32
    return %arg0, %c0_i32, %c0_i32_0 : i32, i32, i32
  }
}

</mosaic_0001>

<bundles_post_ra>
// kernel: tpu_custom_call.1
= control target key start
LH: loop header
LB: loop body
LE: loop exit
PB: predicated region body
PF: predicated region fallthrough
CT: control target
= control target key end

     0   :  { %s3518_s0 = inlined_call_operand.hbm [shape: f32[16,32], index: 0, kind: input, shape index: {}]   ;;  %s3519_s1 = inlined_call_operand.hbm [shape: f32[16,16], index: 1, kind: input, shape index: {}]   ;;  %s3520_s2 = inlined_call_operand.vmem [shape: bf16[2,32,32], index: 2, kind: input, shape index: {}]   ;;  %s3521_s3 = inlined_call_operand.vmem [shape: bf16[2,32,32], index: 3, kind: input, shape index: {}]   ;;  %s3522_s4 = inlined_call_operand.vmem [shape: bf16[2,32,32], index: 4, kind: input, shape index: {}]   ;;  %s3523_s5 = inlined_call_operand.vmem [shape: f32[2,1,32], index: 5, kind: input, shape index: {}]   ;;  %s3524_s6 = inlined_call_operand.hbm [shape: f32[2,1,32], index: 6, kind: input, shape index: {}]   ;;  %s3525_s7 = inlined_call_operand.hbm [shape: bf16[2,32,64], index: 7, kind: input, shape index: {}]   ;;  %s3526_s8 = inlined_call_operand.hbm [shape: f32[2,1,64], index: 8, kind: input, shape index: {}]   ;;  %s3527_s9 = inlined_call_operand.vmem [shape: bf16[2,64,32], index: 9, kind: input, shape index: {}]   ;;  %s3528_s10 = inlined_call_operand.vmem [shape: f32[2,1,32], index: 10, kind: input, shape index: {}]   ;;  %s3529_s11 = inlined_call_operand.vmem [shape: f32[2,1,32], index: 11, kind: input, shape index: {}]   ;;  %s3530_s12 = inlined_call_operand.vmem [shape: f32[2,1,32], index: 12, kind: input, shape index: {}]   ;;  %s3531_s13 = inlined_call_operand.hbm [shape: f32[2,16,32], index: 13, kind: output, shape index: {}]  }
   0x1   :  { %3553 = sst [smem:[#allocation22_spill]] %s3518_s0 }
   0x2   :  { %3554 = sst [smem:[#allocation23_spill]] %s3519_s1 }
   0x3   :  { %3555 = sst [smem:[#allocation24_spill]] %s3520_s2 }
   0x4   :  { %3556 = sst [smem:[#allocation25_spill]] %s3521_s3 }
   0x5   :  { %3557 = sst [smem:[#allocation26_spill]] %s3522_s4 }
   0x6   :  { %3558 = sst [smem:[#allocation27_spill]] %s3524_s6 }
   0x7   :  { %3559 = sst [smem:[#allocation28_spill]] %s3525_s7 }
   0x8   :  { %3560 = sst [smem:[#allocation29_spill]] %s3527_s9 }
   0x9   :  { %3561 = sst [smem:[#allocation30_spill]] %s3528_s10 }
   0xa   :  { %3562 = sst [smem:[#allocation31_spill]] %s3529_s11 }
   0xb   :  { %3563 = sst [smem:[#allocation32_spill]] %s3530_s12 }
   0xc   :  { %3564 = sst [smem:[#allocation33_spill]] %s3531_s13 }
   0xd   :  { %18 = vsyncpa [#allocation4], 0 }
   0xe   :  { %19 = vsyncpa [#allocation7], 0 }
   0xf   :  { %20 = vsyncpa [#allocation5], 0 }
  0x10   :  { %22 = vsyncpa [#allocation5 + $0x1], 0  ;;  %s2964_s25 = smov 0   ;;  %s2966_s26 = smov 0  }
  0x11   :  { %s2968_s27 = smov 0   ;;  %s2970_s28 = smov 0  }
  0x12 LB: > { %3565 = sst [smem:[#allocation16_spill]] %s2861_s25  ;;  %s2985_s29 = sadd.s32 4294967295, %s2873_s28   ;;  %s2873_s28 = sphi %s2970_s28, %s3620_s28   ;;  %s2869_s27 = sphi %s2968_s27, %s3622_s27   ;;  %s2865_s26 = sphi %s2966_s26, %s3624_s26   ;;  %s2861_s25 = sphi %s2964_s25, %s3623_s25  }
  0x13   : > { %3566 = sst [smem:[#allocation17_spill]] %s2869_s27  ;;  %s2202_s30 = sadd.s32 4294967294, %s2873_s28  }
  0x14   : > { %p194_p0 = scmp.ne.s32.totalorder %s2865_s26, %s2861_s25  ;;  %p3535_p1 = scmp.eq.s32.totalorder %s2985_s29, 0 }
  0x15   : > { %p380_p3 = scmp.eq.s32.totalorder %s2202_s30, 1  ;;  %p2203_p5 = scmp.ge.s32.totalorder %s2873_s28, 1 }
  0x16   : > { %p2994_p4 = por %p3535_p1, %p194_p0  ;;  %p387_p7 = scmp.lt.s32.totalorder %s2873_s28, 3 }
  0x17   : > { %p2999_p6 = por %p380_p3, %p194_p0  ;;  %s2875_s17 = smov [#allocation3]  }
  0x18   : > { %s3567_s14 = scalar_select %p2994_p4, 1, 0 }
  0x19   : > { %s3568_s15 = scalar_select %p2999_p6, 1, 0 }
  0x1a   : > { %p3005_p9 = pnand %p2203_p5, %p387_p7  ;;  %s399_s18 = sshll.u32 %s2875_s17, 4  ;;  %s3009_s18 = int_to_ptr.vmem [resolvable:$true] %s399_s18 }
  0x1b   : > { %3569 = sst [smem:[#allocation18_spill]] %s3568_s15  ;;  %s3021_s20 = sadd.s32 1, %s2873_s28  }
  0x1c   : > { %s3570_s16 = scalar_select %p3005_p9, 1, 0 }
  0x1d   : > { %p2489_p10 = pneg %p3005_p9  ;;  %3572 = sst [smem:[#allocation19_spill]] %s3021_s20 }
  0x1e   : > { %s181_s21 = sadd.s32 1, %s2869_s27  ;;  %s178_s22 = ssub.s32 %s2873_s28, %s3021_s20 }
  0x1f   : > { %p3016_p12 = pnand %p2489_p10, %p3535_p1  ;;  %s3573_s0 = sld [smem:[#allocation22_spill]] }
  0x21   : > { %s3571_s19 = scalar_select %p3016_p12, 1, 0 }
  0x22   : > { %p3544_p0 = pneg %p3016_p12 }
  0x25   : > { %s2653_s30 = scalar_lea.hbm %s3573_s0, 256 }
  0x26   : > { %p2654_p13 = scmp.ne.s32.totalorder %s3573_s0, %s2653_s30  ;;  %p2660_p7 = scmp.lt.u32.totalorder %s2653_s30, %s3573_s0 }
  0x28   : > { %p2656_p3 = pnand %p3544_p0, %p2654_p13 }
  0x2a   : > { %p2657_p5 = pneg %p2656_p3 }
  0x2c   : > { %p2662_p10 = pnand %p2660_p7, %p2657_p5 }
  0x2e   : > { %2665 = shalt.err (!%p2662_p10)
}
  0x2f   : > { %s2666_s23 = scalar_lea.vmem %s3009_s18, 256  ;;  %p2674_p2 = scmp.lt.s32.totalorder %s3009_s18, %s3009_s18 }
  0x30   : > { %p2667_p11 = scmp.ne.s32.totalorder %s3009_s18, %s2666_s23  ;;  %p2675_p13 = scmp.lt.s32.totalorder %s2666_s23, %s2666_s23 }
  0x32   : > { %p2669_p8 = pnand %p2667_p11, %p3544_p0  ;;  %p2676_p3 = por %p2675_p13, %p2674_p2 }
  0x34   : > { %p2670_p1 = pneg %p2669_p8 }
  0x36   : > { %p2677_p6 = pnand %p2676_p3, %p2670_p1 }
  0x38   : > { %2680 = shalt.err (!%p2677_p6)
}
  0x39   : > { %s3538_s13 = smov 128   ;;  %s3539_s25 = smov 8  }
  0x3a   : > { %2492 = dma.hbm_to_vmem [thread:$0]  (!%p3016_p12), %s3573_s0, 256, %s3009_s18, [#allocation4], %s3538_s13, %s3538_s13, %s3539_s25  }
  0x3b   : > { %p179_p1 = scmp.eq.s32.totalorder %s178_s22, 0  ;;  %p188_p2 = scmp.ne.s32.totalorder %s2869_s27, %s2865_s26 }
  0x3c   : > { %p189_p6 = scmp.eq.s32.totalorder %s2873_s28, 0  ;;  %p2512_p8 = scmp.lt.s32.totalorder %s2873_s28, 2 }
  0x3d   : > { %s3061_s30 = scalar_select %p179_p1, %s2869_s27, %s181_s21  }
  0x3e   : > { %p190_p11 = por %p189_p6, %p188_p2  ;;  %p3575_p5 = scmp.eq.s32.totalorder %s2985_s29, 1 }
  0x3f   : > { %3574 = sst [smem:[#allocation20_spill]] %s3061_s30  ;;  %s456_s23 = sand.u32 1, %s2873_s28  }
  0x40   : > { %p3065_p7 = por %p3575_p5, %p188_p2  ;;  %s3071_s20 = sand.u32 1, %s2869_s27  }
  0x41   : > { %s3541_s15 = sshll.u32 %s2873_s28, 4  ;;  %s459_s18 = scalar_lea.vmem [#allocation8], %s3071_s20 }
  0x42   : > { %s3576_s17 = scalar_select %p3065_p7, 1, 0 }
  0x43   : > { %s466_s22 = sshll.u32 %s459_s18, 4  ;;  %s3578_s6 = sld [smem:[#allocation27_spill]]  ;;  %s3082_s22 = int_to_ptr.vmem [resolvable:$true] %s466_s22 }
  0x44   : > { %3577 = sst [smem:[#allocation21_spill]] %s3576_s17  ;;  %p3084_p10 = pnand %p2512_p8, %p190_p11 }
  0x45   : > { %s2208_s0 = sshll.u32 %s3071_s20, 4  ;;  %s3093_s13 = scalar_lea.sflag [#allocation4], %s456_s23 }
  0x46   : > { %s3579_s25 = scalar_select %p3084_p10, 1, 0 }
  0x47   : > { %s3090_s18 = scalar_lea.vmem [#allocation9], %s2208_s0  ;;  %p3099_p3 = pneg %p3084_p10 }
  0x48   : > { %s484_s27 = sshll.u32 %s3090_s18, 4  ;;  %s3125_s27 = int_to_ptr.vmem [resolvable:$true] %s484_s27 }
  0x49   : > { %s3080_s21 = scalar_lea.hbm %s3578_s6, %s3541_s15  ;;  %s2686_s0 = scalar_lea.hbm %s3578_s6, 32 }
  0x4a   : > { %s2681_s24 = scalar_lea.hbm %s3080_s21, 16  ;;  %p2687_p6 = scmp.lt.u32.totalorder %s3080_s21, %s3578_s6 }
  0x4b   : > { %p2682_p13 = scmp.ne.s32.totalorder %s3080_s21, %s2681_s24  ;;  %p2688_p8 = scmp.lt.u32.totalorder %s2686_s0, %s2681_s24 }
  0x4c   : > { %s3580_s15 = scalar_select %p3099_p3, 1, 0 }
  0x4d   : > { %p2684_p1 = pnand %p3099_p3, %p2682_p13  ;;  %p2689_p11 = por %p2688_p8, %p2687_p6 }
  0x4e   : > { %p2690_p5 = scmp.lt.u32.totalorder %s2681_s24, %s3080_s21 }
  0x4f   : > { %p2685_p2 = pneg %p2684_p1 }
  0x50   : > { %p2691_p0 = por %p2690_p5, %p2689_p11 }
  0x52   : > { %p2692_p7 = pnand %p2691_p0, %p2685_p2 }
  0x54   : > { %2695 = shalt.err (!%p2692_p7)
}
  0x55   : > { %s2696_s23 = scalar_lea.vmem %s3082_s22, 16  ;;  %s2878_s12 = smov [#allocation8]  }
  0x56   : > { %p2697_p13 = scmp.ne.s32.totalorder %s3082_s22, %s2696_s23  ;;  %s2701_s17 = sshll.u32 %s2878_s12, 4  ;;  %s2702_s17 = int_to_ptr.vmem [resolvable:$false] %s2701_s17 }
  0x57   : > { %s2703_s11 = scalar_lea.vmem %s2702_s17, 32  ;;  %p2704_p9 = scmp.lt.s32.totalorder %s3082_s22, %s2702_s17 }
  0x58   : > { %p2699_p1 = pnand %p2697_p13, %p3099_p3  ;;  %p2705_p12 = scmp.lt.s32.totalorder %s2703_s11, %s2696_s23 }
  0x5a   : > { %p2700_p4 = pneg %p2699_p1  ;;  %p2706_p6 = por %p2705_p12, %p2704_p9 }
  0x5c   : > { %p2707_p8 = pnand %p2706_p6, %p2700_p4 }
  0x5e   : > { %2710 = shalt.err (!%p2707_p8)
}
  0x5f   : > { %2499 = dma.hbm_to_vmem [thread:$0]  (!%p3084_p10), %s3080_s21, 16, %s3082_s22, %s3093_s13  }
  0x60   : > { %s3581_s30 = sshll.u32 %s2873_s28, 8  ;;  %s3582_s7 = sld [smem:[#allocation28_spill]] }
  0x66   : > { %s3132_s23 = scalar_lea.hbm %s3582_s7, %s3581_s30  ;;  %s2716_s21 = scalar_lea.hbm %s3582_s7, 512 }
  0x67   : > { %s2711_s12 = scalar_lea.hbm %s3132_s23, 256  ;;  %p2717_p0 = scmp.lt.u32.totalorder %s3132_s23, %s3582_s7 }
  0x68   : > { %p2712_p4 = scmp.ne.s32.totalorder %s3132_s23, %s2711_s12  ;;  %p2718_p7 = scmp.lt.u32.totalorder %s2716_s21, %s2711_s12 }
  0x69   : > { %p2720_p11 = scmp.lt.u32.totalorder %s2711_s12, %s3132_s23 }
  0x6a   : > { %p2714_p9 = pnand %p2712_p4, %p3099_p3  ;;  %p2719_p2 = por %p2718_p7, %p2717_p0 }
  0x6c   : > { %p2715_p12 = pneg %p2714_p9  ;;  %p2721_p5 = por %p2720_p11, %p2719_p2 }
  0x6e   : > { %p2722_p13 = pnand %p2721_p5, %p2715_p12 }
  0x70   : > { %2725 = shalt.err (!%p2722_p13)
}
  0x71   : > { %s2726_s30 = scalar_lea.vmem %s3125_s27, 256  ;;  %s2879_s24 = smov [#allocation9]  }
  0x72   : > { %p2727_p1 = scmp.ne.s32.totalorder %s3125_s27, %s2726_s30  ;;  %s2731_s0 = sshll.u32 %s2879_s24, 4  ;;  %s2732_s0 = int_to_ptr.vmem [resolvable:$false] %s2731_s0 }
  0x73   : > { %s2733_s17 = scalar_lea.vmem %s2732_s0, 512  ;;  %p2734_p4 = scmp.lt.s32.totalorder %s3125_s27, %s2732_s0 }
  0x74   : > { %p2729_p6 = pnand %p2727_p1, %p3099_p3  ;;  %p2735_p9 = scmp.lt.s32.totalorder %s2733_s17, %s2726_s30 }
  0x76   : > { %p2730_p8 = pneg %p2729_p6  ;;  %p2736_p0 = por %p2735_p9, %p2734_p4 }
  0x78   : > { %p2737_p7 = pnand %p2736_p0, %p2730_p8 }
  0x7a   : > { %2740 = shalt.err (!%p2737_p7)
}
  0x7b   : > { %s2880_s12 = smov 64   ;;  %s2881_s22 = smov 4  }
  0x7c   : > { %2502 = dma.hbm_to_vmem [thread:$0]  (!%p3084_p10), %s3132_s23, 256, %s3125_s27, %s3093_s13, %s2880_s12, %s2880_s12, %s2881_s22  }
  0x7d   : > { %s2882_s21 = smov [#allocation6]   ;;  %s3583_s11 = sshll.u32 %s2873_s28, 4 }
  0x7e   : > { %s412_s18 = sshll.u32 %s2882_s21, 4  ;;  %s3161_s30 = scalar_lea.hbm %s3526_s8, %s3583_s11  ;;  %s413_s18 = int_to_ptr.vmem [resolvable:$true] %s412_s18 }
  0x7f   : > { %s497_s17 = scalar_lea.vmem [#allocation10], %s3071_s20  ;;  %s3584_s1 = sld [smem:[#allocation23_spill]] }
  0x80   : > { %s504_s6 = sshll.u32 %s497_s17, 4  ;;  %p3585_p2 = scmp.ne.s32.totalorder %s3571_s19, 0  ;;  %s505_s6 = int_to_ptr.vmem [resolvable:$true] %s504_s6 }
  0x82   : > { %p3586_p11 = pneg %p3585_p2 }
  0x85   : > { %s2741_s9 = scalar_lea.hbm %s3584_s1, 256 }
  0x86   : > { %p2742_p12 = scmp.ne.s32.totalorder %s3584_s1, %s2741_s9  ;;  %p2748_p1 = scmp.lt.u32.totalorder %s2741_s9, %s3584_s1 }
  0x88   : > { %p2744_p5 = pnand %p2742_p12, %p3586_p11 }
  0x8a   : > { %p2745_p13 = pneg %p2744_p5 }
  0x8c   : > { %p2750_p6 = pnand %p2748_p1, %p2745_p13 }
  0x8e   : > { %2753 = shalt.err (!%p2750_p6)
}
  0x8f   : > { %s2754_s20 = scalar_lea.vmem %s413_s18, 256  ;;  %p3587_p4 = pmov %p3586_p11 }
  0x90   : > { %p2755_p8 = scmp.ne.s32.totalorder %s413_s18, %s2754_s20  ;;  %p2762_p7 = scmp.lt.s32.totalorder %s413_s18, %s413_s18 }
  0x91   : > { %p2763_p10 = scmp.lt.s32.totalorder %s2754_s20, %s2754_s20 }
  0x92   : > { %p2757_p9 = pnand %p2755_p8, %p3587_p4 }
  0x93   : > { %p2764_p3 = por %p2763_p10, %p2762_p7 }
  0x94   : > { %p2758_p0 = pneg %p2757_p9 }
  0x96   : > { %p2765_p11 = pnand %p2764_p3, %p2758_p0 }
  0x98   : > { %2768 = shalt.err (!%p2765_p11)
}
  0x99   : > { %s3588_s3 = smov 8   ;;  %s3589_s4 = smov 128  }
  0x9a   : > { %2495 = dma.hbm_to_vmem [thread:$0]  (!%p3585_p2), %s3584_s1, 256, %s413_s18, [#allocation7], %s3589_s4, %s3589_s4, %s3588_s3  }
  0x9b   : > { %s2769_s10 = scalar_lea.hbm %s3161_s30, 16  ;;  %p3590_p10 = scmp.ne.s32.totalorder %s3580_s15, 0 }
  0x9c   : > { %p2770_p12 = scmp.ne.s32.totalorder %s3161_s30, %s2769_s10  ;;  %s2774_s22 = scalar_lea.hbm %s3526_s8, 32 }
  0x9d   : > { %p2775_p13 = scmp.lt.u32.totalorder %s3161_s30, %s3526_s8  ;;  %p2776_p1 = scmp.lt.u32.totalorder %s2774_s22, %s2769_s10 }
  0x9e   : > { %p2772_p3 = pnand %p2770_p12, %p3590_p10  ;;  %p2778_p8 = scmp.lt.u32.totalorder %s2769_s10, %s3161_s30 }
  0x9f   : > { %p2777_p6 = por %p2776_p1, %p2775_p13 }
  0xa0   : > { %p2773_p5 = pneg %p2772_p3 }
  0xa1   : > { %p2779_p4 = por %p2778_p8, %p2777_p6 }
  0xa3   : > { %p2780_p9 = pnand %p2779_p4, %p2773_p5 }
  0xa5   : > { %2783 = shalt.err (!%p2780_p9)
}
  0xa6   : > { %s2784_s18 = scalar_lea.vmem %s505_s6, 16  ;;  %s2883_s24 = smov [#allocation10]  }
  0xa7   : > { %p2785_p2 = scmp.ne.s32.totalorder %s505_s6, %s2784_s18  ;;  %s2789_s0 = sshll.u32 %s2883_s24, 4  ;;  %s2790_s0 = int_to_ptr.vmem [resolvable:$false] %s2789_s0 }
  0xa8   : > { %s2791_s17 = scalar_lea.vmem %s2790_s0, 32  ;;  %p2792_p11 = scmp.lt.s32.totalorder %s505_s6, %s2790_s0 }
  0xa9   : > { %p2787_p0 = pnand %p2785_p2, %p3590_p10  ;;  %p2793_p12 = scmp.lt.s32.totalorder %s2791_s17, %s2784_s18 }
  0xab   : > { %p2788_p7 = pneg %p2787_p0  ;;  %p2794_p3 = por %p2793_p12, %p2792_p11 }
  0xad   : > { %p2795_p1 = pnand %p2794_p3, %p2788_p7 }
  0xaf   : > { %2798 = shalt.err (!%p2795_p1)
}
  0xb0   : > { %p3591_p13 = scmp.ne.s32.totalorder %s3579_s25, 0  ;;  %p3592_p5 = scmp.ne.s32.totalorder %s3570_s16, 0 }
  0xb1   : > { %p3593_p10 = scmp.eq.s32.totalorder (!%p3592_p5), %s2985_s29, 0 }
  0xb2   : > { %2505 = dma.hbm_to_vmem [thread:$0]  (!%p3591_p13), %s3161_s30, 16, %s505_s6, %s3093_s13  }
  0xb3   : > { %539 = sbr.rel (%p3592_p5) target bundleno = 3620 (0xe24), region = 72 }
  0xba   : > { %2844 = dma.done.wait (%p3593_p10), [#allocation4], 256   ;;  %p3594_p6 = pmov %p3593_p10 }
  0xbc   : > { %2846 = vsyncadd (%p3594_p6), [#allocation4], 4294967040  ;;  %p3595_p8 = pmov %p3594_p6 }
  0xbd   : > { %p3596_p4 = pmov %p3594_p6 }
  0xbe   : > { %2848 = dma.done.wait (%p3595_p8), [#allocation7], 256  }
  0xbf   : > { %2850 = vsyncadd (%p3596_p4), [#allocation7], 4294967040  ;;  %s549_s25 = sand.u32 1, %s2985_s29   ;;  %s3217_s6 = sand.u32 1, %s2865_s26  }
  0xc0   : > { %s550_s16 = scalar_lea.sflag [#allocation4], %s549_s25  ;;  %p3597_p9 = scmp.ne.s32.totalorder %s3567_s14, 0 }
  0xc2   : > { %2852 = dma.done.wait (%p3597_p9), %s550_s16, 288  }
  0xc3   : > { %2854 = vsyncadd (%p3597_p9), %s550_s16, 4294967008  ;;  %s2215_s13 = sshll.u32 %s3217_s6, 4  ;;  %p652_p2 = scmp.lt.s32.totalorder %s2985_s29, 1 }
  0xc4   : > { %s3598_s2 = sld [smem:[#allocation24_spill]]  ;;  %s3599_s12 = sld [smem:[#allocation25_spill]] }
  0xc5   : > { %s3227_s30 = scalar_select %p652_p2, %s2985_s29, 1 }
  0xc6   : > { %s3600_s11 = sld [smem:[#allocation26_spill]]  ;;  %s3601_s25 = sld [smem:[#allocation29_spill]] }
  0xc7   : > { %s2279_s27 = sshll.u32 %s3227_s30, 4  ;;  %s2282_s24 = sshll.u32 %s3227_s30, 5 }
  0xc8   : > { %s3602_s3 = sld [smem:[#allocation30_spill]]  ;;  %s3603_s1 = sld [smem:[#allocation31_spill]] }
  0xc9   : > { %s569_s21 = scalar_lea.vmem [#allocation10], %s3217_s6  ;;  %p3605_p0 = scmp.ne.s32.totalorder %s2985_s29, 0 }
  0xca   : > { %s3237_s7 = scalar_lea.vmem %s3598_s2, %s2279_s27  ;;  %s661_s19 = scalar_lea.vmem %s3599_s12, %s2279_s27  ;;  %v689_v0 = vld [vmem:[#allocation3] sm:$0xff] (!%p3605_p0)  ;;  %vm691_vm0 = vcmask (!%p3605_p0), 261120   ;;  %v690_v1 = vld [vmem:[#allocation3 + $0x8] sm:$0xff] (!%p3605_p0) }
  0xcb   : > { %s3604_s2 = sld [smem:[#allocation32_spill]]  ;;  %688 = sbr.rel (%p3605_p0) target bundleno = 210 (0xd2), region = 96  ;;  %692 = vst.msk [vmem:[#allocation2] sm:$0xff] (!%p3605_p0), %vm691_vm0, %v689_v0  ;;  %693 = vst.msk [vmem:[#allocation2 + $0x8] sm:$0xff] (!%p3605_p0), %vm691_vm0, %v690_v1 }
  0xcc   : > { %s3245_s18 = scalar_lea.vmem %s3600_s11, %s2279_s27  ;;  %s3251_s16 = scalar_lea.vmem %s3601_s25, %s2282_s24 }
  0xcd   : > { %s3265_s27 = scalar_lea.vmem [#allocation9], %s2215_s13  ;;  %s3268_s11 = scalar_lea.vmem [#allocation11], %s2215_s13 }
  0xce   : > { %s677_s4 = scalar_lea.vmem %s3602_s3, %s3227_s30  ;;  %s680_s9 = scalar_lea.vmem %s3603_s1, %s3227_s30 }
  0xd1   : > { %s683_s22 = scalar_lea.vmem %s3604_s2, %s3227_s30 }
  0xd2 PF: > { %v2593_v2 = vld [vmem:[%s661_s19] sm:$0xff]   ;;  %v2884_v3 = vmov 0.0   ;;  %v2594_v4 = vld [vmem:[%s661_s19 + $0x8] sm:$0xff]   ;;  %vm2885_vm1 = vmmov 0   ;;  %vm713_vm2 = vcmask 261120   ;;  %vm874_vm3 = vcmask 64512   ;;  %s3608_s24 = scalar_lea.vmem %s3523_s5, %s3227_s30 }
  0xd3   : > { %2341 = vmatprep.subr.bf16.mxu1 %v2884_v3  ;;  %2333 = vmatprep.subr.bf16.mxu0 %v2884_v3  ;;  %v3276_v5 = vld [vmem:[#allocation2] sm:$0xff]  ;;  %v3278_v6 = vld [vmem:[#allocation2 + $0x8] sm:$0xff]  ;;  %vm3299_vm4 = vmpackc.low %vm874_vm3, %vm874_vm3  ;;  %s2886_s1 = smov 120   ;;  %vm962_vm5 = vcmask 130048   ;;  %s2887_s2 = smov 112   ;;  %vm1696_vm6 = vcmask 195584  }
  0xd4   : > { %2342 = vmatpush3.bf16.msra.mxu1 %v2593_v2  ;;  %2345 = vmatprep.mubr.msk.bf16.mxu1 %vm2885_vm1, %v2884_v3  ;;  %v2595_v7 = vld [vmem:[%s3237_s7] sm:$0xff]   ;;  %v2596_v8 = vld [vmem:[%s3237_s7 + $0x8] sm:$0xff]   ;;  %v696_v9 = vpack.c.bf16 %v3278_v6, %v3276_v5  ;;  %s2888_s15 = smov 104   ;;  %s2889_s13 = smov 8   ;;  %vm1869_vm11 = vcmask 523264  }
  0xd5   : > { %2343 = vmatprep.subr.bf16.mxu1 %v2884_v3  ;;  %2337 = vmatprep.mubr.msk.bf16.mxu0 %vm2885_vm1, %v2884_v3  ;;  %v2597_v10 = vld [vmem:[%s3245_s18] sm:$0xff]   ;;  %v2598_v11 = vld [vmem:[%s3245_s18 + $0x8] sm:$0xff]   ;;  %s2890_s14 = smov 16   ;;  %s2891_s7 = smov 24  }
  0xd6   : > { %2334 = vmatpush3.bf16.msra.mxu0 %v2595_v7  ;;  %v3331_v37 = vld [vmem:[#allocation6 + $0x8] sm:$0xff]  ;;  %v3333_v39 = vld [vmem:[#allocation6] sm:$0xff]  ;;  %s3609_s0 = scalar_lea.vmem [#allocation8], %s3217_s6 }
  0xd7   : > { %2335 = vmatprep.subr.bf16.mxu0 %v2884_v3 }
  0xd8   : > { %2344 = vmatpush3.bf16.msra.mxu1 %v2594_v4 }
  0xda   : > { %2336 = vmatpush3.bf16.msra.mxu0 %v2596_v8 }
  0xdb   : > { %2346 = vmatmul.mubr.msk.bf16.vlgmr.msra.gmra.mrb[0].mxu1 %vm713_vm2, %v696_v9  ;;  %2349 = vmatprep.subr.bf16.mxu0 %v2884_v3 }
  0xdd   : > { %2338 = vmatmul.mubr.msk.bf16.vlgmr.msra.gmra.mrb[0].mxu0 %vm713_vm2, %v696_v9 }
  0xde   : > { %2353 = vmatprep.mubr.msk.bf16.mxu0 %vm2885_vm1, %v2884_v3  ;;  %2350 = vmatpush3.bf16.msra.mxu0 %v2597_v10 }
  0xdf   : > { %2351 = vmatprep.subr.bf16.mxu0 %v2884_v3 }
  0xe2   : > { %2352 = vmatpush3.bf16.msra.mxu0 %v2598_v11 }
  0xe5   : > { %2354 = vmatmul.mubr.msk.bf16.vlgmr.msra.gmra.mrb[4].mxu0 %vm713_vm2, %v696_v9 }
 0x1ae   : > { %v808_v12 = vpop.f32.mrb[0].mxu1 }
 0x1af   : > { %v2347_v13 = vpop.f32.mrb[1].mxu1 }
 0x1b0   : > { %v811_v14 = vpop.f32.mrb[2].mxu1  ;;  %v3305_v19 = vpop.f32.mrb[0].mxu0 }
 0x1b1   : > { %v2433_v16 = vpack.c.bf16 %v811_v14, %v808_v12  ;;  %v2348_v17 = vpop.f32.mrb[3].mxu1  ;;  %v3303_v18 = vpack.i.bf16 %v811_v14, %v808_v12  ;;  %v2339_v20 = vpop.f32.mrb[1].mxu0  ;;  %2361 = vmatprep.mubr.msk.f32.mxu1 %vm874_vm3, %v3305_v19 }
 0x1b2   : > { %v3313_v21 = vpop.f32.mrb[2].mxu0 }
 0x1b3   : > { %2564 = vrot.lane.b32.xlu0 %v3303_v18, %s2886_s1  ;;  %2435 = vmatprep.subr.msk.bf16.mxu1 %vm3299_vm4, %v2433_v16  ;;  %v2340_v22 = vpop.f32.mrb[3].mxu0 }
 0x1b4   : > { %2438 = vmatpush3.bf16.xpose.msk.msra.mxu1 %vm3299_vm4, %v2433_v16  ;;  %1068 = vrot.lane.b32.xlu1 %v3313_v21, %s2886_s1 }
 0x1b7   : > { %1066 = vrot.lane.b32.xlu0 %v3305_v19, %s2886_s1 }
 0x1b8   : > { %v865_v23 = vpop.f32.mrb[4].mxu0 }
 0x1b9   : > { %v2355_v24 = vpop.f32.mrb[5].mxu0 }
 0x1ba   : > { %v868_v25 = vpop.f32.mrb[6].mxu0 }
 0x1bb   : > { %2362 = vmatmul.mubr.msk.f32.vlgmr.msra.gmra.mrb[4].mxu1 %vm874_vm3, %v3313_v21  ;;  %v2356_v26 = vpop.f32.mrb[7].mxu0  ;;  %v2439_v27 = vpack.c.bf16 %v868_v25, %v865_v23  ;;  %v3329_v34 = vpack.i.bf16 %v868_v25, %v865_v23 }
 0x1bd   : > { %2440 = vmatprep.subr.bf16.mxu1 %v2439_v27 }
 0x1be   : > { %2442 = vmatpush3.bf16.msra.mxu1 %v2439_v27 }
 0x225   : > { %v2565_v28 = vpop.permute.xlu0 %2564 }
 0x226   : > { %v2567_v29 = vunpack.i.h.bf16 %v2565_v28  ;;  %v2566_v30 = vunpack.i.l.bf16 %v2565_v28  ;;  %v1069_v33 = vpop.permute.xlu1 %1068 }
 0x228   : > { %v2443_v31 = vpack.c.bf16 %v2567_v29, %v2566_v30 }
 0x229   : > { %v1067_v32 = vpop.permute.xlu0 %1066 }
 0x22a   : > { %2445 = vmatprep.subr.msk.bf16.mxu0 %vm3299_vm4, %v2443_v31  ;;  %2375 = vmatprep.mubr.msk.f32.mxu0 %vm874_vm3, %v1067_v32 }
 0x22b   : > { %2448 = vmatpush3.bf16.xpose.msk.msra.mxu0 %vm3299_vm4, %v2443_v31 }
 0x232   : > { %2376 = vmatmul.mubr.msk.f32.vlgmr.msra.gmra.mrb[8].mxu0 %vm874_vm3, %v1069_v33 }
 0x28e   : > { %v2363_v35 = vpop.f32.mrb[4].mxu1 }
 0x28f   : > { %v953_v36 = vpop.f32.mrb[5].mxu1  ;;  %v959_v56 = vadd.f32 %v2363_v35, %v3331_v37 }
 0x290   : > { %v954_v55 = vadd.f32 %v953_v36, %v3333_v39 }
 0x291   : > { %v966_v58 = vsel %vm962_vm5, %v959_v56, -inf }
 0x292   : > { %v963_v57 = vsel %vm962_vm5, %v954_v55, -inf }
 0x305   : > { %v2377_v38 = vpop.f32.mrb[8].mxu0 }
 0x306   : > { %v1154_v40 = vadd.f32 %v2377_v38, %v3331_v37  ;;  %v1148_v41 = vpop.f32.mrb[9].mxu0 }
 0x307   : > { %v1149_v42 = vadd.f32 %v1148_v41, %v3333_v39 }
 0x308   : > { %v1160_v43 = vsel %vm962_vm5, %v1154_v40, -inf }
 0x309   : > { %1161 = vmax.xlane.f32.xlu0 %v1160_v43  ;;  %v1157_v44 = vsel %vm962_vm5, %v1149_v42, -inf }
 0x30a   : > { %1158 = vmax.xlane.f32.xlu1 %v1157_v44 }
 0x396   : > { %v1162_v45 = vpop.xlane.xlu0 %1161 }
 0x397   : > { %v1164_v46 = vsub.f32 %v1154_v40, %v1162_v45  ;;  %v1159_v47 = vpop.xlane.xlu1 %1158 }
 0x398   : > { %v1163_v48 = vsub.f32 %v1149_v42, %v1159_v47 }
 0x399   : > { %v1167_v49 = vmul.f32 1.442695, %v1164_v46 }
 0x39a   : > { %v1165_v50 = vmul.f32 1.442695, %v1163_v48 }
 0x39b   : > { %2605 = vpow2.f32 %v1167_v49 }
 0x39c   : > { %2607 = vpow2.f32 %v1165_v50 }
 0x3a5   : > { %v2606_v51 = vpop.eup %2605 }
 0x3a6   : > { %v2608_v52 = vpop.eup %2607  ;;  %v1172_v53 = vsel %vm962_vm5, %v2606_v51, 0.0 }
 0x3a7   : > { %1173 = vadd.xlane.f32.xlu1 %v1172_v53  ;;  %v1169_v54 = vsel %vm962_vm5, %v2608_v52, 0.0 }
 0x3a8   : > { %1170 = vadd.xlane.f32.xlu0 %v1169_v54 }
 0x3b8   : > { %2574 = vrot.lane.b32.xlu1 %v3303_v18, %s2887_s2 }
 0x3bc   : > { %1268 = vrot.lane.b32.xlu1 %v3305_v19, %s2887_s2 }
 0x3be   : > { %2569 = vrot.lane.b32.xlu0 %v3329_v34, %s2886_s1  ;;  %s1992_s1 = sshll.u32 %s3268_s11, 4  ;;  %s3470_s1 = int_to_ptr.vmem [resolvable:$true] %s1992_s1 }
 0x3bf   : > { %s2799_s30 = scalar_lea.vmem %s3470_s1, 256 }
 0x3c0   : > { %p2800_p7 = scmp.ne.s32.totalorder %s3470_s1, %s2799_s30 }
 0x3c2   : > { %1270 = vrot.lane.b32.xlu0 %v3313_v21, %s2887_s2 }
 0x3e0   : > { %964 = vmax.xlane.f32.xlu1 %v963_v57 }
 0x3e1   : > { %967 = vmax.xlane.f32.xlu0 %v966_v58 }
 0x434   : > { %v1174_v59 = vpop.xlane.xlu1 %1173 }
 0x435   : > { %2609 = vrcp.f32 %v1174_v59  ;;  %v1171_v60 = vpop.xlane.xlu0 %1170 }
 0x436   : > { %2611 = vrcp.f32 %v1171_v60 }
 0x438   : > { %v2575_v61 = vpop.permute.xlu1 %2574 }
 0x439   : > { %v2570_v62 = vpop.permute.xlu0 %2569  ;;  %v2577_v63 = vunpack.i.h.bf16 %v2575_v61  ;;  %v2576_v0 = vunpack.i.l.bf16 %v2575_v61 }
 0x43a   : > { %v2572_v1 = vunpack.i.h.bf16 %v2570_v62  ;;  %v2571_v2 = vunpack.i.l.bf16 %v2570_v62 }
 0x43b   : > { %v2453_v7 = vpack.c.bf16 %v2577_v63, %v2576_v0 }
 0x43c   : > { %v2449_v4 = vpack.c.bf16 %v2572_v1, %v2571_v2  ;;  %v1269_v12 = vpop.permute.xlu1 %1268 }
 0x43d   : > { %v1271_v13 = vpop.permute.xlu0 %1270 }
 0x43e   : > { %2450 = vmatprep.subr.bf16.mxu0 %v2449_v4 }
 0x43f   : > { %v2610_v8 = vpop.eup %2609  ;;  %2452 = vmatpush3.bf16.msra.mxu0 %v2449_v4 }
 0x440   : > { %v2612_v9 = vpop.eup %2611  ;;  %2455 = vmatprep.subr.msk.bf16.mxu0 %vm3299_vm4, %v2453_v7  ;;  %v1178_v11 = vmul.f32 %v2610_v8, %v2606_v51 }
 0x441   : > { %v1177_v10 = vmul.f32 %v2612_v9, %v2608_v52 }
 0x443   : > { %2382 = vmatprep.mubr.msk.f32.mxu0 %vm962_vm5, %v1177_v10 }
 0x444   : > { %2383 = vmatmul.mubr.msk.f32.vlgmr.msra.gmra.mrb[10].mxu0 %vm962_vm5, %v1178_v11 }
 0x445   : > { %2389 = vmatprep.mubr.msk.f32.mxu0 %vm874_vm3, %v1269_v12 }
 0x448   : > { %2458 = vmatpush3.bf16.xpose.msk.msra.mxu0 %vm3299_vm4, %v2453_v7 }
 0x44f   : > { %2390 = vmatmul.mubr.msk.f32.vlgmr.msra.gmra.mrb[12].mxu0 %vm874_vm3, %v1271_v13 }
 0x46d   : > { %v965_v16 = vpop.xlane.xlu1 %964 }
 0x46e   : > { %v968_v14 = vpop.xlane.xlu0 %967  ;;  %v969_v20 = vsub.f32 %v954_v55, %v965_v16 }
 0x46f   : > { %v970_v17 = vsub.f32 %v959_v56, %v968_v14 }
 0x470   : > { %v971_v25 = vmul.f32 1.442695, %v969_v20 }
 0x471   : > { %v973_v23 = vmul.f32 1.442695, %v970_v17 }
 0x473   : > { %2613 = vpow2.f32 %v973_v23 }
 0x474   : > { %2615 = vpow2.f32 %v971_v25 }
 0x47d   : > { %v2614_v31 = vpop.eup %2613 }
 0x47e   : > { %v2616_v33 = vpop.eup %2615  ;;  %v978_v35 = vsel %vm962_vm5, %v2614_v31, 0.0 }
 0x47f   : > { %v975_v36 = vsel %vm962_vm5, %v2616_v33, 0.0 }
 0x517   : > { %v3361_v22 = vpop.f32.mrb[10].mxu0 }
 0x518   : > { %v3363_v24 = vpop.f32.mrb[11].mxu0 }
 0x522   : > { %v2391_v26 = vpop.f32.mrb[12].mxu0 }
 0x523   : > { %v1356_v27 = vadd.f32 %v2391_v26, %v3331_v37  ;;  %v1350_v28 = vpop.f32.mrb[13].mxu0 }
 0x524   : > { %v1351_v29 = vadd.f32 %v1350_v28, %v3333_v39 }
 0x525   : > { %v1362_v30 = vsel %vm962_vm5, %v1356_v27, -inf }
 0x526   : > { %1363 = vmax.xlane.f32.xlu1 %v1362_v30  ;;  %v1359_v32 = vsel %vm962_vm5, %v1351_v29, -inf }
 0x527   : > { %1360 = vmax.xlane.f32.xlu0 %v1359_v32 }
 0x52a   : > { %979 = vadd.xlane.f32.xlu1 %v978_v35 }
 0x52b   : > { %976 = vadd.xlane.f32.xlu0 %v975_v36 }
 0x5b3   : > { %v1364_v38 = vpop.xlane.xlu1 %1363 }
 0x5b4   : > { %v1366_v40 = vsub.f32 %v1356_v27, %v1364_v38  ;;  %v1361_v41 = vpop.xlane.xlu0 %1360 }
 0x5b5   : > { %v1365_v42 = vsub.f32 %v1351_v29, %v1361_v41 }
 0x5b6   : > { %v1369_v43 = vmul.f32 1.442695, %v1366_v40 }
 0x5b7   : > { %v1367_v44 = vmul.f32 1.442695, %v1365_v42  ;;  %v980_v45 = vpop.xlane.xlu1 %979 }
 0x5b8   : > { %2617 = vpow2.f32 %v1369_v43  ;;  %v977_v46 = vpop.xlane.xlu0 %976 }
 0x5b9   : > { %2619 = vpow2.f32 %v1367_v44 }
 0x5ba   : > { %2621 = vrcp.f32 %v980_v45 }
 0x5bb   : > { %2623 = vrcp.f32 %v977_v46 }
 0x5c2   : > { %v2618_v47 = vpop.eup %2617 }
 0x5c3   : > { %v2620_v48 = vpop.eup %2619  ;;  %v1374_v49 = vsel %vm962_vm5, %v2618_v47, 0.0 }
 0x5c4   : > { %v2622_v50 = vpop.eup %2621  ;;  %1375 = vadd.xlane.f32.xlu1 %v1374_v49  ;;  %v1371_v51 = vsel %vm962_vm5, %v2620_v48, 0.0 }
 0x5c5   : > { %v2624_v52 = vpop.eup %2623  ;;  %1372 = vadd.xlane.f32.xlu0 %v1371_v51  ;;  %v984_v54 = vmul.f32 %v2622_v50, %v2614_v31 }
 0x5c6   : > { %v983_v53 = vmul.f32 %v2624_v52, %v2616_v33 }
 0x5c8   : > { %2368 = vmatprep.mubr.msk.f32.mxu1 %vm962_vm5, %v983_v53 }
 0x5c9   : > { %2369 = vmatmul.mubr.msk.f32.vlgmr.msra.gmra.mrb[6].mxu1 %vm962_vm5, %v984_v54 }
 0x5d5   : > { %2584 = vrot.lane.b32.xlu1 %v3303_v18, %s2888_s15 }
 0x5d9   : > { %1468 = vrot.lane.b32.xlu1 %v3305_v19, %s2888_s15 }
 0x5db   : > { %2579 = vrot.lane.b32.xlu0 %v3329_v34, %s2887_s2 }
 0x5df   : > { %1470 = vrot.lane.b32.xlu0 %v3313_v21, %s2888_s15 }
 0x651   : > { %v1376_v55 = vpop.xlane.xlu1 %1375 }
 0x652   : > { %2625 = vrcp.f32 %v1376_v55  ;;  %v1373_v56 = vpop.xlane.xlu0 %1372 }
 0x653   : > { %2627 = vrcp.f32 %v1373_v56 }
 0x655   : > { %v2585_v57 = vpop.permute.xlu1 %2584 }
 0x656   : > { %v2580_v58 = vpop.permute.xlu0 %2579  ;;  %v2587_v59 = vunpack.i.h.bf16 %v2585_v57  ;;  %v2586_v60 = vunpack.i.l.bf16 %v2585_v57 }
 0x657   : > { %v2582_v61 = vunpack.i.h.bf16 %v2580_v58  ;;  %v2581_v62 = vunpack.i.l.bf16 %v2580_v58 }
 0x658   : > { %v2463_v63 = vpack.c.bf16 %v2587_v59, %v2586_v60 }
 0x659   : > { %v2459_v18 = vpack.c.bf16 %v2582_v61, %v2581_v62  ;;  %v1469_v2 = vpop.permute.xlu1 %1468 }
 0x65a   : > { %v1471_v4 = vpop.permute.xlu0 %1470 }
 0x65b   : > { %2460 = vmatprep.subr.bf16.mxu1 %v2459_v18 }
 0x65c   : > { %v2626_v19 = vpop.eup %2625  ;;  %2462 = vmatpush3.bf16.msra.mxu1 %v2459_v18 }
 0x65d   : > { %v2628_v0 = vpop.eup %2627  ;;  %2465 = vmatprep.subr.msk.bf16.mxu1 %vm3299_vm4, %v2463_v63  ;;  %v1380_v1 = vmul.f32 %v2626_v19, %v2618_v47 }
 0x65e   : > { %v1379_v21 = vmul.f32 %v2628_v0, %v2620_v48  ;;  %v2599_v0 = vld [vmem:[%s3265_s27] sm:$0xff]  }
 0x660   : > { %2396 = vmatprep.mubr.msk.f32.mxu1 %vm962_vm5, %v1379_v21  ;;  %v2600_v21 = vld [vmem:[%s3265_s27 + $0x8] sm:$0xff]   ;;  %s3613_s27 = sld [smem:[#allocation21_spill]] }
 0x661   : > { %2397 = vmatmul.mubr.msk.f32.vlgmr.msra.gmra.mrb[8].mxu1 %vm962_vm5, %v1380_v1  ;;  %v2601_v1 = vld [vmem:[%s3251_s16] sm:$0xff]  }
 0x662   : > { %2403 = vmatprep.mubr.msk.f32.mxu1 %vm874_vm3, %v1469_v2  ;;  %v2602_v2 = vld [vmem:[%s3251_s16 + $0x8] sm:$0xff]  }
 0x665   : > { %2468 = vmatpush3.bf16.xpose.msk.msra.mxu1 %vm3299_vm4, %v2463_v63 }
 0x666   : > { %2421 = vmatprep.subr.bf16.mxu1 %v2884_v3  ;;  %p3615_p11 = scmp.ne.s32.totalorder %s3613_s27, 0 }
 0x668   : > { %p2801_p12 = pnand %p2800_p7, %p3615_p11 }
 0x66a   : > { %p2802_p3 = pneg %p2801_p12 }
 0x66c   : > { %2404 = vmatmul.mubr.msk.f32.vlgmr.msra.gmra.mrb[10].mxu1 %vm874_vm3, %v1471_v4 }
 0x66d   : > { %2429 = vmatprep.mubr.msk.bf16.mxu1 %vm2885_vm1, %v2884_v3  ;;  %2422 = vmatpush3.bf16.msra.mxu1 %v2601_v1 }
 0x66e   : > { %2423 = vmatprep.subr.bf16.mxu1 %v2884_v3 }
 0x671   : > { %2424 = vmatpush3.bf16.msra.mxu1 %v2602_v2 }
 0x672   : > { %2425 = vmatprep.subr.bf16.mxu1 %v2884_v3 }
 0x69c   : > { %v2370_v7 = vpop.f32.mrb[6].mxu1 }
 0x69d   : > { %v1057_v8 = vpop.f32.mrb[7].mxu1 }
 0x734   : > { %v2398_v9 = vpop.f32.mrb[8].mxu1 }
 0x735   : > { %v1459_v10 = vpop.f32.mrb[9].mxu1 }
 0x73f   : > { %v2405_v11 = vpop.f32.mrb[10].mxu1 }
 0x740   : > { %v1556_v12 = vadd.f32 %v2405_v11, %v3331_v37  ;;  %v1550_v13 = vpop.f32.mrb[11].mxu1 }
 0x741   : > { %v1551_v14 = vadd.f32 %v1550_v13, %v3333_v39 }
 0x742   : > { %v1562_v15 = vsel %vm962_vm5, %v1556_v12, -inf }
 0x743   : > { %1563 = vmax.xlane.f32.xlu0 %v1562_v15  ;;  %v1559_v16 = vsel %vm962_vm5, %v1551_v14, -inf }
 0x744   : > { %1560 = vmax.xlane.f32.xlu1 %v1559_v16 }
 0x7d0   : > { %v1564_v17 = vpop.xlane.xlu0 %1563 }
 0x7d1   : > { %v1566_v20 = vsub.f32 %v1556_v12, %v1564_v17  ;;  %v1561_v23 = vpop.xlane.xlu1 %1560 }
 0x7d2   : > { %v1565_v25 = vsub.f32 %v1551_v14, %v1561_v23 }
 0x7d3   : > { %v1569_v26 = vmul.f32 1.442695, %v1566_v20 }
 0x7d4   : > { %v1567_v27 = vmul.f32 1.442695, %v1565_v25 }
 0x7d5   : > { %2629 = vpow2.f32 %v1569_v26 }
 0x7d6   : > { %2631 = vpow2.f32 %v1567_v27 }
 0x7df   : > { %v2630_v28 = vpop.eup %2629 }
 0x7e0   : > { %v2632_v29 = vpop.eup %2631  ;;  %v1574_v37 = vsel %vm962_vm5, %v2630_v28, 0.0 }
 0x7e1   : > { %1575 = vadd.xlane.f32.xlu1 %v1574_v37  ;;  %v1571_v39 = vsel %vm962_vm5, %v2632_v29, 0.0 }
 0x7e2   : > { %1572 = vadd.xlane.f32.xlu0 %v1571_v39 }
 0x7f2   : > { %1670 = vrot.lane.b32.xlu1 %v3363_v24, %s2889_s13 }
 0x7f6   : > { %1672 = vrot.lane.b32.xlu1 %v3361_v22, %s2889_s13 }
 0x7f8   : > { %2589 = vrot.lane.b32.xlu0 %v3329_v34, %s2888_s15  ;;  %s3614_s15 = sld [smem:[#allocation33_spill]] }
 0x7fa   : > { %1680 = vrot.lane.b32.xlu1 %v2398_v9, %s2890_s14 }
 0x7fc   : > { %1678 = vrot.lane.b32.xlu0 %v1459_v10, %s2890_s14 }
 0x86e   : > { %v1576_v30 = vpop.xlane.xlu1 %1575 }
 0x86f   : > { %2633 = vrcp.f32 %v1576_v30  ;;  %v1573_v31 = vpop.xlane.xlu0 %1572 }
 0x870   : > { %2635 = vrcp.f32 %v1573_v31  ;;  %v2260_v31 = vld [vmem:[%s3609_s0] ss:$0 sm:$0xff] }
 0x872   : > { %v1671_v42 = vpop.permute.xlu1 %1670 }
 0x873   : > { %v2590_v32 = vpop.permute.xlu0 %2589  ;;  %v1692_v47 = vsel %vm874_vm3, %v1057_v8, %v1671_v42 }
 0x874   : > { %v2592_v33 = vunpack.i.h.bf16 %v2590_v32  ;;  %v2591_v35 = vunpack.i.l.bf16 %v2590_v32 }
 0x876   : > { %v2469_v36 = vpack.c.bf16 %v2592_v33, %v2591_v35  ;;  %v1673_v43 = vpop.permute.xlu1 %1672 }
 0x877   : > { %v1679_v45 = vpop.permute.xlu0 %1678  ;;  %v1693_v46 = vsel %vm874_vm3, %v2370_v7, %v1673_v43 }
 0x878   : > { %2470 = vmatprep.subr.bf16.mxu0 %v2469_v36  ;;  %v1694_v50 = vsel %vm962_vm5, %v1692_v47, %v1679_v45 }
 0x879   : > { %v2634_v38 = vpop.eup %2633  ;;  %2472 = vmatpush3.bf16.msra.mxu0 %v2469_v36 }
 0x87a   : > { %v2636_v24 = vpop.eup %2635  ;;  %2413 = vmatprep.subr.bf16.mxu0 %v2884_v3  ;;  %v1580_v40 = vmul.f32 %v2634_v38, %v2630_v28  ;;  %v1681_v44 = vpop.permute.xlu1 %1680  ;;  %v2603_v38 = vld [vmem:[%s3251_s16 + $0x10] sm:$0xff]  }
 0x87b   : > { %v1579_v22 = vmul.f32 %v2636_v24, %v2632_v29  ;;  %v1695_v48 = vsel %vm962_vm5, %v1693_v46, %v1681_v44  ;;  %v2259_v29 = vld [vmem:[%s3608_s24] ss:$0 sm:$0xff]  ;;  %2426 = vmatpush3.bf16.msra.mxu1 %v2603_v38  ;;  %v2604_v24 = vld [vmem:[%s3251_s16 + $0x18] sm:$0xff]  }
 0x87c   : > { %2427 = vmatprep.subr.bf16.mxu1 %v2884_v3 }
 0x87d   : > { %2410 = vmatprep.mubr.msk.f32.mxu0 %vm962_vm5, %v1579_v22  ;;  %v2261_v22 = vld [vmem:[%s569_s21] ss:$0 sm:$0xff]  ;;  %s2283_s21 = sshll.u32 %s2985_s29, 8  ;;  %s1979_s29 = scalar_lea.sflag [#allocation5], %s3217_s6 }
 0x87e   : > { %2411 = vmatmul.mubr.msk.f32.vlgmr.msra.gmra.mrb[14].mxu0 %vm962_vm5, %v1580_v40  ;;  %s3468_s14 = scalar_lea.hbm %s3614_s15, %s2283_s21 }
 0x87f   : > { %2417 = vmatprep.mubr.msk.bf16.mxu0 %vm2885_vm1, %v2884_v3  ;;  %2414 = vmatpush3.bf16.msra.mxu0 %v2599_v0 }
 0x880   : > { %2415 = vmatprep.subr.bf16.mxu0 %v2884_v3  ;;  %2428 = vmatpush3.bf16.msra.mxu1 %v2604_v24  ;;  %v2265_v3 = vld [vmem:[%s677_s4] ss:$0 sm:$0xff] }
 0x883   : > { %2416 = vmatpush3.bf16.msra.mxu0 %v2600_v21 }
 0x951   : > { %v2412_v34 = vpop.f32.mrb[14].mxu0 }
 0x952   : > { %1688 = vrot.lane.b32.xlu1 %v2412_v34, %s2891_s7  ;;  %v1659_v41 = vpop.f32.mrb[15].mxu0 }
 0x953   : > { %1686 = vrot.lane.b32.xlu0 %v1659_v41, %s2891_s7 }
 0x9c4   : > { %v1689_v49 = vpop.permute.xlu1 %1688 }
 0x9c5   : > { %v1698_v51 = vsel %vm1696_vm6, %v1695_v48, %v1689_v49  ;;  %v1687_v52 = vpop.permute.xlu0 %1686 }
 0x9c6   : > { %v1697_v53 = vsel %vm1696_vm6, %v1694_v50, %v1687_v52  ;;  %v1700_v54 = vadd.f32 %v1698_v51, %v3278_v6 }
 0x9c7   : > { %v1699_v55 = vadd.f32 %v1697_v53, %v3276_v5 }
 0x9c8   : > { %v1706_v56 = vsel %vm713_vm2, %v1700_v54, 0.0 }
 0x9c9   : > { %1707 = vadd.xlane.f32.xlu1 %v1706_v56  ;;  %v1703_v57 = vsel %vm713_vm2, %v1699_v55, 0.0 }
 0x9ca   : > { %1704 = vadd.xlane.f32.xlu0 %v1703_v57 }
 0xa56   : > { %v1708_v58 = vpop.xlane.xlu1 %1707 }
 0xa57   : > { %v1710_v59 = vmul.f32 0.03125, %v1708_v58  ;;  %v1705_v60 = vpop.xlane.xlu0 %1704 }
 0xa58   : > { %v1709_v61 = vmul.f32 0.03125, %v1705_v60 }
 0xa59   : > { %v1712_v62 = vsub.f32 %v1700_v54, %v1710_v59 }
 0xa5a   : > { %v1711_v18 = vsub.f32 %v1699_v55, %v1709_v61 }
 0xa5b   : > { %v1714_v5 = vmul.f32 %v1712_v62, %v1712_v62 }
 0xa5c   : > { %v1713_v63 = vmul.f32 %v1711_v18, %v1711_v18 }
 0xa5d   : > { %v1718_v19 = vsel %vm713_vm2, %v1714_v5, 0.0 }
 0xa5e   : > { %v1715_v6 = vsel %vm713_vm2, %v1713_v63, 0.0 }
 0xa5f   : > { %1716 = vadd.xlane.f32.xlu0 %v1715_v6 }
 0xa63   : > { %1719 = vadd.xlane.f32.xlu0 %v1718_v19 }
 0xaec   : > { %v1717_v4 = vpop.xlane.xlu0 %1716 }
 0xaed   : > { %v1721_v7 = vmul.f32 0.032258064, %v1717_v4 }
 0xaef   : > { %2637 = vrsqrt.f32 %v1721_v7  ;;  %vm1725_vm7 = vcmp.eq.f32.partialorder %v1721_v7, inf  ;;  %v1728_v12 = vand.u32 2147483648, %v1721_v7  ;;  %vm1727_vm8 = vcmp.eq.f32.partialorder %v1721_v7, 0.0 }
 0xaf0   : > { %v1720_v8 = vpop.xlane.xlu0 %1719 }
 0xaf1   : > { %v1722_v9 = vmul.f32 0.032258064, %v1720_v8 }
 0xaf3   : > { %2639 = vrsqrt.f32 %v1722_v9  ;;  %vm1732_vm9 = vcmp.eq.f32.partialorder %v1722_v9, inf  ;;  %v1735_v20 = vand.u32 2147483648, %v1722_v9  ;;  %vm1734_vm10 = vcmp.eq.f32.partialorder %v1722_v9, 0.0 }
 0xaf9   : > { %v2638_v10 = vpop.eup %2637 }
 0xafa   : > { %v1724_v11 = vmul.f32 %v2638_v10, %v1721_v7 }
 0xafc   : > { %v1726_v13 = vsel %vm1725_vm7, %v1721_v7, %v1724_v11 }
 0xafd   : > { %v2640_v14 = vpop.eup %2639  ;;  %v1729_v15 = vsel %vm1727_vm8, %v1728_v12, %v1726_v13 }
 0xafe   : > { %v1737_v16 = vadd.f32 1e-06, %v1729_v15  ;;  %v1731_v17 = vmul.f32 %v2640_v14, %v1722_v9 }
 0xb00   : > { %2641 = vrcp.f32 %v1737_v16  ;;  %v1733_v23 = vsel %vm1732_vm9, %v1722_v9, %v1731_v17 }
 0xb01   : > { %v1736_v25 = vsel %vm1734_vm10, %v1735_v20, %v1733_v23  ;;  %v2271_v23 = vld [vmem:[%s680_s9] ss:$0 sm:$0xff] }
 0xb02   : > { %v1738_v26 = vadd.f32 1e-06, %v1736_v25 }
 0xb04   : > { %2643 = vrcp.f32 %v1738_v26  ;;  %v2272_v26 = vld [vmem:[%s683_s22] ss:$0 sm:$0xff]  ;;  %s2892_s22 = smov [#allocation11]  }
 0xb05   : > { %s2803_s7 = sshll.u32 %s2892_s22, 4  ;;  %s2804_s7 = int_to_ptr.vmem [resolvable:$false] %s2803_s7 }
 0xb06   : > { %s2805_s19 = scalar_lea.vmem %s2804_s7, 512  ;;  %p2806_p1 = scmp.lt.s32.totalorder %s3470_s1, %s2804_s7 }
 0xb07   : > { %p2807_p13 = scmp.lt.s32.totalorder %s2805_s19, %s2799_s30 }
 0xb09   : > { %p2808_p5 = por %p2807_p13, %p2806_p1 }
 0xb0a   : > { %v2642_v27 = vpop.eup %2641 }
 0xb0b   : > { %v1741_v28 = vmul.f32 %v2642_v27, %v1711_v18  ;;  %p2809_p10 = pnand %p2808_p5, %p2802_p3 }
 0xb0d   : > { %v1749_v30 = vmul.f32 %v2259_v29, %v1741_v28 }
 0xb0e   : > { %v2644_v37 = vpop.eup %2643 }
 0xb0f   : > { %v1742_v39 = vmul.f32 %v2644_v37, %v1712_v62  ;;  %v1757_v33 = vadd.f32 %v2260_v31, %v1749_v30 }
 0xb11   : > { %v1750_v32 = vmul.f32 %v2259_v29, %v1742_v39 }
 0xb13   : > { %v1758_v35 = vadd.f32 %v2260_v31, %v1750_v32 }
 0xb15   : > { %v1759_v36 = vpack.c.bf16 %v1758_v35, %v1757_v33 }
 0xb17   : > { %2418 = vmatmul.mubr.msk.bf16.vlgmr.msra.gmra.mrb[16].mxu0 %vm713_vm2, %v1759_v36 }
 0xbea   : > { %v1820_v40 = vpop.f32.mrb[16].mxu0 }
 0xbeb   : > { %v1821_v34 = vadd.f32 %v2261_v22, %v1820_v40  ;;  %v2419_v41 = vpop.f32.mrb[17].mxu0 }
 0xbec   : > { %v1823_v42 = vpop.f32.mrb[18].mxu0 }
 0xbed   : > { %v1824_v43 = vadd.f32 %v2261_v22, %v1823_v42  ;;  %v2420_v44 = vpop.f32.mrb[19].mxu0  ;;  %v1827_v45 = vmax.f32 %v1821_v34, 0.0 }
 0xbef   : > { %v1828_v46 = vmax.f32 %v1824_v43, 0.0 }
 0xbf1   : > { %v1829_v47 = vpack.c.bf16 %v1828_v46, %v1827_v45 }
 0xbf3   : > { %2430 = vmatmul.mubr.msk.bf16.vlgmr.msra.gmra.mrb[12].mxu1 %vm1869_vm11, %v1829_v47 }
 0xcc6   : > { %v1907_v48 = vpop.f32.mrb[12].mxu1 }
 0xcc7   : > { %v1908_v49 = vadd.f32 %v2265_v3, %v1907_v48  ;;  %v2431_v50 = vpop.f32.mrb[13].mxu1 }
 0xcc8   : > { %v1910_v51 = vpop.f32.mrb[14].mxu1 }
 0xcc9   : > { %v1911_v52 = vadd.f32 %v2265_v3, %v1910_v51  ;;  %v2432_v53 = vpop.f32.mrb[15].mxu1  ;;  %v1914_v54 = vadd.f32 %v1908_v49, %v1757_v33 }
 0xccb   : > { %v1918_v55 = vsel %vm713_vm2, %v1914_v54, 0.0  ;;  %v1915_v56 = vadd.f32 %v1911_v52, %v1758_v35 }
 0xccc   : > { %1919 = vadd.xlane.f32.xlu1 %v1918_v55 }
 0xccd   : > { %v1921_v57 = vsel %vm713_vm2, %v1915_v56, 0.0 }
 0xcce   : > { %1922 = vadd.xlane.f32.xlu0 %v1921_v57 }
 0xd59   : > { %v1920_v58 = vpop.xlane.xlu1 %1919 }
 0xd5a   : > { %v1924_v59 = vmul.f32 0.03125, %v1920_v58 }
 0xd5b   : > { %v1923_v60 = vpop.xlane.xlu0 %1922 }
 0xd5c   : > { %v1926_v61 = vsub.f32 %v1914_v54, %v1924_v59  ;;  %v1925_v62 = vmul.f32 0.03125, %v1923_v60 }
 0xd5e   : > { %v1927_v18 = vsub.f32 %v1915_v56, %v1925_v62  ;;  %v1928_v63 = vmul.f32 %v1926_v61, %v1926_v61 }
 0xd60   : > { %v1930_v6 = vsel %vm713_vm2, %v1928_v63, 0.0  ;;  %v1929_v5 = vmul.f32 %v1927_v18, %v1927_v18 }
 0xd61   : > { %1931 = vadd.xlane.f32.xlu1 %v1930_v6 }
 0xd62   : > { %v1933_v19 = vsel %vm713_vm2, %v1929_v5, 0.0 }
 0xd63   : > { %1934 = vadd.xlane.f32.xlu0 %v1933_v19 }
 0xdee   : > { %v1932_v0 = vpop.xlane.xlu1 %1931 }
 0xdef   : > { %v1936_v21 = vmul.f32 0.032258064, %v1932_v0 }
 0xdf0   : > { %v1935_v1 = vpop.xlane.xlu0 %1934 }
 0xdf1   : > { %2645 = vrsqrt.f32 %v1936_v21  ;;  %v1937_v2 = vmul.f32 0.032258064, %v1935_v1  ;;  %vm1940_vm12 = vcmp.eq.f32.partialorder %v1936_v21, inf  ;;  %v1943_v8 = vand.u32 2147483648, %v1936_v21 }
 0xdf2   : > { %vm1942_vm13 = vcmp.eq.f32.partialorder %v1936_v21, 0.0 }
 0xdf3   : > { %2647 = vrsqrt.f32 %v1937_v2  ;;  %vm1947_vm14 = vcmp.eq.f32.partialorder %v1937_v2, inf  ;;  %v1950_v14 = vand.u32 2147483648, %v1937_v2  ;;  %vm1949_vm15 = vcmp.eq.f32.partialorder %v1937_v2, 0.0 }
 0xdfb   : > { %v2646_v4 = vpop.eup %2645 }
 0xdfc   : > { %v1939_v7 = vmul.f32 %v2646_v4, %v1936_v21 }
 0xdfd   : > { %v2648_v9 = vpop.eup %2647 }
 0xdfe   : > { %v1941_v10 = vsel %vm1940_vm12, %v1936_v21, %v1939_v7  ;;  %v1946_v12 = vmul.f32 %v2648_v9, %v1937_v2 }
 0xdff   : > { %v1944_v11 = vsel %vm1942_vm13, %v1943_v8, %v1941_v10 }
 0xe00   : > { %v1952_v13 = vadd.f32 1e-06, %v1944_v11  ;;  %v1948_v15 = vsel %vm1947_vm14, %v1937_v2, %v1946_v12 }
 0xe01   : > { %v1951_v16 = vsel %vm1949_vm15, %v1950_v14, %v1948_v15 }
 0xe02   : > { %2649 = vrcp.f32 %v1952_v13  ;;  %v1953_v17 = vadd.f32 1e-06, %v1951_v16 }
 0xe04   : > { %2651 = vrcp.f32 %v1953_v17 }
 0xe0c   : > { %v2650_v20 = vpop.eup %2649 }
 0xe0d   : > { %v1956_v25 = vmul.f32 %v2650_v20, %v1926_v61 }
 0xe0e   : > { %v2652_v27 = vpop.eup %2651 }
 0xe0f   : > { %v1964_v28 = vmul.f32 %v2271_v23, %v1956_v25  ;;  %v1957_v29 = vmul.f32 %v2652_v27, %v1927_v18 }
 0xe11   : > { %v1972_v37 = vadd.f32 %v2272_v26, %v1964_v28  ;;  %v1965_v39 = vmul.f32 %v2271_v23, %v1957_v29 }
 0xe13   : > { %1974 = vst.msk [vmem:[#allocation2] sm:$0xff] %vm713_vm2, %v1972_v37  ;;  %1976 = vst.msk [vmem:[%s3268_s11] sm:$0xff] %vm713_vm2, %v1972_v37  ;;  %v1973_v30 = vadd.f32 %v2272_v26, %v1965_v39 }
 0xe15   : > { %1975 = vst.msk [vmem:[#allocation2 + $0x8] sm:$0xff] %vm713_vm2, %v1973_v30  ;;  %1977 = vst.msk [vmem:[%s3268_s11 + $0x8] sm:$0xff] %vm713_vm2, %v1973_v30 }
 0xe16   : > { %2812 = shalt.err (!%p2809_p10)
}
 0xe17   : > { %s2813_s11 = scalar_lea.hbm %s3468_s14, 256  ;;  %s2817_s0 = scalar_lea.hbm %s3614_s15, 512 }
 0xe18   : > { %p2814_p6 = scmp.ne.s32.totalorder %s3468_s14, %s2813_s11  ;;  %p2818_p9 = scmp.lt.u32.totalorder %s3468_s14, %s3614_s15 }
 0xe19   : > { %p2819_p2 = scmp.lt.u32.totalorder %s2817_s0, %s2813_s11  ;;  %p2821_p7 = scmp.lt.u32.totalorder %s2813_s11, %s3468_s14 }
 0xe1a   : > { %p2815_p8 = pnand %p2814_p6, %p3615_p11 }
 0xe1b   : > { %p2820_p0 = por %p2819_p2, %p2818_p9 }
 0xe1c   : > { %p2816_p4 = pneg %p2815_p8 }
 0xe1d   : > { %p2822_p12 = por %p2821_p7, %p2820_p0 }
 0xe1f   : > { %p2823_p3 = pnand %p2822_p12, %p2816_p4 }
 0xe21   : > { %2826 = shalt.err (!%p2823_p3)
}
 0xe22   : > { %s2893_s23 = smov 128  }
 0xe23   : > { %2487 = dma.vmem_to_hbm [thread:$0]  (%p3615_p11), %s3470_s1, 256, %s3468_s14, %s1979_s29, %s2893_s23, %s2893_s23, %s2889_s13  }
 0xe24 PF: > { %s3616_s16 = sld [smem:[#allocation16_spill]]  ;;  %s3617_s20 = sld [smem:[#allocation18_spill]] }
 0xe25   : > { %p3619_p13 = scmp.ge.s32.totalorder %s2873_s28, 2 }
 0xe2a   : > { %s2007_s3 = sand.u32 1, %s3616_s16   ;;  %p3618_p1 = scmp.ne.s32.totalorder %s3617_s20, 0 }
 0xe2b   : > { %s2008_s4 = scalar_lea.sflag [#allocation5], %s2007_s3 }
 0xe2c   : > { %p2507_p5 = pnand %p3619_p13, %p3618_p1 }
 0xe2e   : > { %2856 = dma.done.wait (!%p2507_p5), %s2008_s4, 256  }
 0xe2f   : > { %2858 = vsyncadd (!%p2507_p5), %s2008_s4, 4294967040  ;;  %s3620_s28 = sld [smem:[#allocation19_spill]]  ;;  %s3621_s10 = sld [smem:[#allocation17_spill]] }
 0xe30   : > { %s3622_s27 = sld [smem:[#allocation20_spill]]  ;;  %s3623_s25 = smov %s2865_s26 }
 0xe35   : > { %p25_p10 = scmp.ge.s32.totalorder %s3620_s28, 4   ;;  %s3624_s26 = smov %s3621_s10 }
 0xe37   :  { %27 = sbr.rel (!%p25_p10) target bundleno = 18 (0x12), region = 174 }
 0xe3e   :  { %2013 = vsyncpa [#allocation4], 1 }
 0xe3f   :  { %2015 = vsyncpa [#allocation4 + $0x1], 1 }
 0xe40   :  { %2016 = vsyncpa [#allocation7], 1 }
 0xe41   :  { %2017 = vsyncpa [#allocation5], 1 }
 0xe42   :  { %2019 = vsyncpa [#allocation5 + $0x1], 1 }

</bundles_post_ra>
